<compile_context>
chip_gen: v7x
topology: tpu7x:2x2x1
jax: 0.10.0
libtpu: 0.0.40
codegen_flags: <defaults>
</compile_context>

<pallas_src>
import functools
import math

import jax
import jax.numpy as jnp
from jax.experimental import pallas as pl
from jax.experimental.pallas import tpu as pltpu


_VMEM_LIMIT = 32 * 1024 * 1024


# ----------------------- fused conv matmul (+pool) kernel -------------------

def _conv_mm_kernel(cols_ref, w_ref, b_ref, o_ref, *, n_corners, m):
    """o = relu(max_j(W @ cols[:, j*m:(j+1)*m]) + b) == maxpool(relu(conv(x))).

    cols_ref: (K, n_corners*m) f32   (n_corners == 1 -> no pooling)
    w_ref:    (Cout, K)        f32
    b_ref:    (Cout, 1)        f32
    o_ref:    (Cout, m)        f32   (m = N*Ho*Wo, lane-dense)
    """
    acc = jnp.dot(w_ref[...], cols_ref[...], preferred_element_type=jnp.float32)
    r = acc[:, 0:m]
    for j in range(1, n_corners):                 # cheap VALU lane-slice max
        r = jnp.maximum(r, acc[:, j * m:(j + 1) * m])
    o_ref[...] = jnp.maximum(r + b_ref[...], 0.0).astype(o_ref.dtype)


def conv_matmul_pool(cols_cat, w_mat, b_col, n_corners):
    """cols_cat: (K, n_corners*M) f32; w_mat: (Cout, K) f32; b_col: (Cout, 1) f32.
    Returns y^T: (Cout, M) f32 with M = N*Ho*Wo on the lane axis."""
    K, total = cols_cat.shape
    M = total // n_corners
    Cout = w_mat.shape[0]
    flops = 2 * Cout * K * total
    bytes_accessed = 4 * (cols_cat.size + w_mat.size + b_col.size + Cout * M)
    return pl.pallas_call(
        functools.partial(_conv_mm_kernel, n_corners=n_corners, m=M),
        out_shape=jax.ShapeDtypeStruct((Cout, M), jnp.float32),
        grid_spec=pltpu.PrefetchScalarGridSpec(
            num_scalar_prefetch=0,
            grid=(1,),                              # single step: overhead-bound
            in_specs=[
                pl.BlockSpec((K, total), lambda i: (0, 0)),
                pl.BlockSpec((Cout, K), lambda i: (0, 0)),
                pl.BlockSpec((Cout, 1), lambda i: (0, 0)),
            ],
            out_specs=pl.BlockSpec((Cout, M), lambda i: (0, 0)),
        ),
        compiler_params=pltpu.CompilerParams(
            dimension_semantics=("arbitrary",),
            vmem_limit_bytes=_VMEM_LIMIT),
        cost_estimate=pl.CostEstimate(flops=flops, transcendentals=0,
                                      bytes_accessed=bytes_accessed),
    )(cols_cat, w_mat, b_col)


def conv3x3_relu_pool(x_cnhw, w_hwio, b, *, pool):
    """Conv2d(3x3, stride 1, pad 1) + ReLU (+ optionally fused MaxPool2d(2,2)).

    Activations use the transposed layout (C, N, H, W) so the matmul output
    (Cout, N*Ho*Wo) is lane-dense. im2col (pad / shifted strided slices /
    stack) is pure data movement and stays in XLA.
    """
    C, N, H, W = x_cnhw.shape
    Cout = w_hwio.shape[-1]
    xp = jnp.pad(x_cnhw, ((0, 0), (0, 0), (1, 1), (1, 1)))
    if pool:
        Ho, Wo = H // 2, W // 2
        M = N * Ho * Wo
        corner_blocks = []
        for hb in range(2):
            for wb in range(2):
                pats = [xp[:, :, dy + hb:dy + hb + 2 * Ho:2,
                              dx + wb:dx + wb + 2 * Wo:2]
                        for dy in range(3) for dx in range(3)]
                corner_blocks.append(
                    jnp.stack(pats, axis=0).reshape(9 * C, M))   # (9C, M)
        cols_cat = jnp.concatenate(corner_blocks, axis=1)        # (9C, 4M)
        n_corners = 4
    else:
        Ho, Wo = H, W
        M = N * Ho * Wo
        pats = [xp[:, :, dy:dy + H, dx:dx + W]
                for dy in range(3) for dx in range(3)]
        cols_cat = jnp.stack(pats, axis=0).reshape(9 * C, M)     # (9C, M)
        n_corners = 1
    cols_cat = cols_cat.astype(jnp.float32)
    w_mat = w_hwio.reshape(9 * C, Cout).T.astype(jnp.float32)    # (Cout, 9C)
    b_col = b.reshape(Cout, 1).astype(jnp.float32)
    y_t = conv_matmul_pool(cols_cat, w_mat, b_col, n_corners)    # (Cout, M)
    return y_t.reshape(Cout, N, Ho, Wo)


# --------------------------- fused FC stack kernel ---------------------------

def _fc_stack_kernel(x_ref, w1_ref, b1_ref, w2_ref, b2_ref, w3_ref, b3_ref,
                     o_ref):
    h = jnp.dot(x_ref[...], w1_ref[...], preferred_element_type=jnp.float32)
    h = jnp.maximum(h + b1_ref[...], 0.0)
    h = jnp.dot(h, w2_ref[...], preferred_element_type=jnp.float32)
    h = jnp.maximum(h + b2_ref[...], 0.0)
    h = jnp.dot(h, w3_ref[...], preferred_element_type=jnp.float32)
    o_ref[...] = (h + b3_ref[...]).astype(o_ref.dtype)


def fc_stack(x, fc1, fc2, fc3):
    """relu(fc1) -> relu(fc2) -> fc3 in ONE pallas_call (weights all in VMEM)."""
    (w1, b1), (w2, b2), (w3, b3) = fc1, fc2, fc3
    Nb, K1 = x.shape
    H1, H2, n_out = w1.shape[1], w2.shape[1], w3.shape[1]
    b1r = b1.reshape(1, H1).astype(jnp.float32)
    b2r = b2.reshape(1, H2).astype(jnp.float32)
    b3r = b3.reshape(1, n_out).astype(jnp.float32)

    def full(shape):
        return pl.BlockSpec(shape, lambda i, _s=shape: (0,) * len(_s))

    flops = 2 * Nb * (K1 * H1 + H1 * H2 + H2 * n_out)
    bytes_accessed = 4 * (x.size + w1.size + w2.size + w3.size +
                          b1.size + b2.size + b3.size + Nb * n_out)
    return pl.pallas_call(
        _fc_stack_kernel,
        out_shape=jax.ShapeDtypeStruct((Nb, n_out), jnp.float32),
        grid_spec=pltpu.PrefetchScalarGridSpec(
            num_scalar_prefetch=0,
            grid=(1,),
            in_specs=[full(x.shape), full(w1.shape), full(b1r.shape),
                      full(w2.shape), full(b2r.shape),
                      full(w3.shape), full(b3r.shape)],
            out_specs=full((Nb, n_out)),
        ),
        compiler_params=pltpu.CompilerParams(
            dimension_semantics=("arbitrary",),
            vmem_limit_bytes=_VMEM_LIMIT),
        cost_estimate=pl.CostEstimate(flops=flops, transcendentals=0,
                                      bytes_accessed=bytes_accessed),
    )(x.astype(jnp.float32),
      w1.astype(jnp.float32), b1r,
      w2.astype(jnp.float32), b2r,
      w3.astype(jnp.float32), b3r)


# ------------------------------- Parameters ---------------------------------

def init_params(key, n_features, output_size):
    """Deterministic synthetic init, PyTorch-style U(-1/sqrt(fan_in), +)."""
    F = int(n_features)

    def conv_p(k, cin, cout):
        k1, k2 = jax.random.split(k)
        bound = 1.0 / math.sqrt(cin * 9)
        w = jax.random.uniform(k1, (3, 3, cin, cout), jnp.float32, -bound, bound)
        bb = jax.random.uniform(k2, (cout,), jnp.float32, -bound, bound)
        return w, bb

    def lin_p(k, fin, fout):
        k1, k2 = jax.random.split(k)
        bound = 1.0 / math.sqrt(fin)
        w = jax.random.uniform(k1, (fin, fout), jnp.float32, -bound, bound)
        bb = jax.random.uniform(k2, (fout,), jnp.float32, -bound, bound)
        return w, bb

    keys = jax.random.split(key, 6)
    return {
        "conv1": conv_p(keys[0], 3, F),
        "conv2": conv_p(keys[1], F, 2 * F),
        "conv3": conv_p(keys[2], 2 * F, 4 * F),
        "fc1": lin_p(keys[3], 4 * F * 8 * 8, 120),
        "fc2": lin_p(keys[4], 120, 84),
        "fc3": lin_p(keys[5], 84, output_size),
    }


# -------------------------------- Forward -----------------------------------

def cnn_forward(params, x_nchw, n_features):
    F = int(n_features)
    N = x_nchw.shape[0]
    x = jnp.transpose(x_nchw, (1, 0, 2, 3))                    # (C, N, H, W)
    x = conv3x3_relu_pool(x, *params["conv1"], pool=True)      # (F, N, 16, 16)
    x = conv3x3_relu_pool(x, *params["conv2"], pool=True)      # (2F, N, 8, 8)
    x = conv3x3_relu_pool(x, *params["conv3"], pool=False)     # (4F, N, 8, 8)
    # match torch's x.view(-1, 4F*8*8): per-sample flatten in (C, H, W) order
    x = jnp.transpose(x.reshape(4 * F, N, 64), (1, 0, 2)).reshape(N, 4 * F * 64)
    return fc_stack(x, params["fc1"], params["fc2"], params["fc3"])


# ---------------------------------- Main -------------------------------------

if __name__ == "__main__":
    n_features = 4
    output_size = 10
    batch = 2

    key = jax.random.PRNGKey(0)
    kx, kp = jax.random.split(key)
    # NCHW input; 32x32 spatial is implied by fc1 = Linear(4F*8*8, 120).
    x = jax.random.normal(kx, (batch, 3, 32, 32), jnp.float32)
    params = init_params(kp, n_features, output_size)

    fwd = jax.jit(functools.partial(cnn_forward, n_features=n_features))
    out = jax.block_until_ready(fwd(params, x))

    assert out.shape == (batch, output_size), out.shape
    assert out.dtype == jnp.float32, out.dtype
    assert bool(jnp.all(jnp.isfinite(out)))
    print("KERNEL_OK")
</pallas_src>

<mosaic_0001>
module attributes {stable_mosaic.version = 11 : i64} {
  func.func @_conv_mm_kernel(%arg0: i32, %arg1: memref<27x2048xf32, #tpu.memory_space<vmem>>, %arg2: memref<4x27xf32, #tpu.memory_space<vmem>>, %arg3: memref<4x1xf32, #tpu.memory_space<vmem>>, %arg4: memref<4x512xf32, #tpu.memory_space<vmem>>) attributes {dimension_semantics = [#tpu.dimension_semantics<arbitrary>], iteration_bounds = array<i64: 1>, scalar_prefetch = 0 : i64, scratch_operands = 0 : i64, tpu.core_type = #tpu.core_type<tc>, window_params = [{pipeline_mode = #tpu.pipeline_mode<synchronous>, transform_indices = @transform_0, window_bounds = array<i64: 27, 2048>}, {pipeline_mode = #tpu.pipeline_mode<synchronous>, transform_indices = @transform_1, window_bounds = array<i64: 4, 27>}, {pipeline_mode = #tpu.pipeline_mode<synchronous>, transform_indices = @transform_2, window_bounds = array<i64: 4, 1>}, {pipeline_mode = #tpu.pipeline_mode<synchronous>, transform_indices = @transform_3, window_bounds = array<i64: 4, 512>}]} {
    %c0 = arith.constant 0 : index
    %c0_0 = arith.constant 0 : index
    %0 = vector.load %arg2[%c0, %c0_0] : memref<4x27xf32, #tpu.memory_space<vmem>>, vector<4x27xf32>
    %c0_1 = arith.constant 0 : index
    %c0_2 = arith.constant 0 : index
    %1 = vector.load %arg1[%c0_1, %c0_2] : memref<27x2048xf32, #tpu.memory_space<vmem>>, vector<27x2048xf32>
    %cst = arith.constant dense<0.000000e+00> : vector<4x2048xf32>
    %2 = tpu.matmul %0, %1, %cst {dimension_numbers = #tpu.dot_dimension_numbers<[1], [0], [0], [1], [0, 0, 1, 1], [], []>} : vector<4x27xf32>, vector<27x2048xf32>, vector<4x2048xf32> -> vector<4x2048xf32>
    %3 = vector.extract_strided_slice %2 {offsets = [0, 0], sizes = [4, 512], strides = [1, 1]} : vector<4x2048xf32> to vector<4x512xf32>
    %4 = vector.extract_strided_slice %2 {offsets = [0, 512], sizes = [4, 512], strides = [1, 1]} : vector<4x2048xf32> to vector<4x512xf32>
    %5 = arith.maximumf %3, %4 : vector<4x512xf32>
    %6 = vector.extract_strided_slice %2 {offsets = [0, 1024], sizes = [4, 512], strides = [1, 1]} : vector<4x2048xf32> to vector<4x512xf32>
    %7 = arith.maximumf %5, %6 : vector<4x512xf32>
    %8 = vector.extract_strided_slice %2 {offsets = [0, 1536], sizes = [4, 512], strides = [1, 1]} : vector<4x2048xf32> to vector<4x512xf32>
    %9 = arith.maximumf %7, %8 : vector<4x512xf32>
    %c0_3 = arith.constant 0 : index
    %c0_4 = arith.constant 0 : index
    %10 = vector.load %arg3[%c0_3, %c0_4] : memref<4x1xf32, #tpu.memory_space<vmem>>, vector<4x1xf32>
    %11 = vector.broadcast %10 : vector<4x1xf32> to vector<4x512xf32>
    %12 = arith.addf %9, %11 : vector<4x512xf32>
    %cst_5 = arith.constant 0.000000e+00 : f32
    %13 = vector.broadcast %cst_5 : f32 to vector<4x512xf32>
    %14 = arith.maximumf %12, %13 : vector<4x512xf32>
    %c0_6 = arith.constant 0 : index
    %c0_7 = arith.constant 0 : index
    %15 = vector.load %arg4[%c0_6, %c0_7] : memref<4x512xf32, #tpu.memory_space<vmem>>, vector<4x512xf32>
    tpu.vector_store %arg4[%c0_6, %c0_7], %14 {strides = array<i32>} : memref<4x512xf32, #tpu.memory_space<vmem>>, vector<4x512xf32>,
    return
  }
  func.func @transform_0(%arg0: i32) -> (i32, i32) {
    %c0_i32 = arith.constant 0 : i32
    %c0_i32_0 = arith.constant 0 : i32
    %c0_i32_1 = arith.constant 0 : i32
    return %c0_i32, %c0_i32_0 : i32, i32
  }
  func.func @transform_1(%arg0: i32) -> (i32, i32) {
    %c0_i32 = arith.constant 0 : i32
    %c0_i32_0 = arith.constant 0 : i32
    %c0_i32_1 = arith.constant 0 : i32
    return %c0_i32, %c0_i32_0 : i32, i32
  }
  func.func @transform_2(%arg0: i32) -> (i32, i32) {
    %c0_i32 = arith.constant 0 : i32
    %c0_i32_0 = arith.constant 0 : i32
    %c0_i32_1 = arith.constant 0 : i32
    return %c0_i32, %c0_i32_0 : i32, i32
  }
  func.func @transform_3(%arg0: i32) -> (i32, i32) {
    %c0_i32 = arith.constant 0 : i32
    %c0_i32_0 = arith.constant 0 : i32
    %c0_i32_1 = arith.constant 0 : i32
    return %c0_i32, %c0_i32_0 : i32, i32
  }
}

module attributes {stable_mosaic.version = 11 : i64} {
  func.func @_conv_mm_kernel(%arg0: i32, %arg1: memref<36x512xf32, #tpu.memory_space<vmem>>, %arg2: memref<8x36xf32, #tpu.memory_space<vmem>>, %arg3: memref<8x1xf32, #tpu.memory_space<vmem>>, %arg4: memref<8x128xf32, #tpu.memory_space<vmem>>) attributes {dimension_semantics = [#tpu.dimension_semantics<arbitrary>], iteration_bounds = array<i64: 1>, scalar_prefetch = 0 : i64, scratch_operands = 0 : i64, tpu.core_type = #tpu.core_type<tc>, window_params = [{pipeline_mode = #tpu.pipeline_mode<synchronous>, transform_indices = @transform_0, window_bounds = array<i64: 36, 512>}, {pipeline_mode = #tpu.pipeline_mode<synchronous>, transform_indices = @transform_1, window_bounds = array<i64: 8, 36>}, {pipeline_mode = #tpu.pipeline_mode<synchronous>, transform_indices = @transform_2, window_bounds = array<i64: 8, 1>}, {pipeline_mode = #tpu.pipeline_mode<synchronous>, transform_indices = @transform_3, window_bounds = array<i64: 8, 128>}]} {
    %c0 = arith.constant 0 : index
    %c0_0 = arith.constant 0 : index
    %0 = vector.load %arg2[%c0, %c0_0] : memref<8x36xf32, #tpu.memory_space<vmem>>, vector<8x36xf32>
    %c0_1 = arith.constant 0 : index
    %c0_2 = arith.constant 0 : index
    %1 = vector.load %arg1[%c0_1, %c0_2] : memref<36x512xf32, #tpu.memory_space<vmem>>, vector<36x512xf32>
    %cst = arith.constant dense<0.000000e+00> : vector<8x512xf32>
    %2 = tpu.matmul %0, %1, %cst {dimension_numbers = #tpu.dot_dimension_numbers<[1], [0], [0], [1], [0, 0, 1, 1], [], []>} : vector<8x36xf32>, vector<36x512xf32>, vector<8x512xf32> -> vector<8x512xf32>
    %3 = vector.extract_strided_slice %2 {offsets = [0, 0], sizes = [8, 128], strides = [1, 1]} : vector<8x512xf32> to vector<8x128xf32>
    %4 = vector.extract_strided_slice %2 {offsets = [0, 128], sizes = [8, 128], strides = [1, 1]} : vector<8x512xf32> to vector<8x128xf32>
    %5 = arith.maximumf %3, %4 : vector<8x128xf32>
    %6 = vector.extract_strided_slice %2 {offsets = [0, 256], sizes = [8, 128], strides = [1, 1]} : vector<8x512xf32> to vector<8x128xf32>
    %7 = arith.maximumf %5, %6 : vector<8x128xf32>
    %8 = vector.extract_strided_slice %2 {offsets = [0, 384], sizes = [8, 128], strides = [1, 1]} : vector<8x512xf32> to vector<8x128xf32>
    %9 = arith.maximumf %7, %8 : vector<8x128xf32>
    %c0_3 = arith.constant 0 : index
    %c0_4 = arith.constant 0 : index
    %10 = vector.load %arg3[%c0_3, %c0_4] : memref<8x1xf32, #tpu.memory_space<vmem>>, vector<8x1xf32>
    %11 = vector.broadcast %10 : vector<8x1xf32> to vector<8x128xf32>
    %12 = arith.addf %9, %11 : vector<8x128xf32>
    %cst_5 = arith.constant 0.000000e+00 : f32
    %13 = vector.broadcast %cst_5 : f32 to vector<8x128xf32>
    %14 = arith.maximumf %12, %13 : vector<8x128xf32>
    %c0_6 = arith.constant 0 : index
    %c0_7 = arith.constant 0 : index
    %15 = vector.load %arg4[%c0_6, %c0_7] : memref<8x128xf32, #tpu.memory_space<vmem>>, vector<8x128xf32>
    tpu.vector_store %arg4[%c0_6, %c0_7], %14 {strides = array<i32>} : memref<8x128xf32, #tpu.memory_space<vmem>>, vector<8x128xf32>,
    return
  }
  func.func @transform_0(%arg0: i32) -> (i32, i32) {
    %c0_i32 = arith.constant 0 : i32
    %c0_i32_0 = arith.constant 0 : i32
    %c0_i32_1 = arith.constant 0 : i32
    return %c0_i32, %c0_i32_0 : i32, i32
  }
  func.func @transform_1(%arg0: i32) -> (i32, i32) {
    %c0_i32 = arith.constant 0 : i32
    %c0_i32_0 = arith.constant 0 : i32
    %c0_i32_1 = arith.constant 0 : i32
    return %c0_i32, %c0_i32_0 : i32, i32
  }
  func.func @transform_2(%arg0: i32) -> (i32, i32) {
    %c0_i32 = arith.constant 0 : i32
    %c0_i32_0 = arith.constant 0 : i32
    %c0_i32_1 = arith.constant 0 : i32
    return %c0_i32, %c0_i32_0 : i32, i32
  }
  func.func @transform_3(%arg0: i32) -> (i32, i32) {
    %c0_i32 = arith.constant 0 : i32
    %c0_i32_0 = arith.constant 0 : i32
    %c0_i32_1 = arith.constant 0 : i32
    return %c0_i32, %c0_i32_0 : i32, i32
  }
}

module attributes {stable_mosaic.version = 11 : i64} {
  func.func @_conv_mm_kernel(%arg0: i32, %arg1: memref<72x128xf32, #tpu.memory_space<vmem>>, %arg2: memref<16x72xf32, #tpu.memory_space<vmem>>, %arg3: memref<16x1xf32, #tpu.memory_space<vmem>>, %arg4: memref<16x128xf32, #tpu.memory_space<vmem>>) attributes {dimension_semantics = [#tpu.dimension_semantics<arbitrary>], iteration_bounds = array<i64: 1>, scalar_prefetch = 0 : i64, scratch_operands = 0 : i64, tpu.core_type = #tpu.core_type<tc>, window_params = [{pipeline_mode = #tpu.pipeline_mode<synchronous>, transform_indices = @transform_0, window_bounds = array<i64: 72, 128>}, {pipeline_mode = #tpu.pipeline_mode<synchronous>, transform_indices = @transform_1, window_bounds = array<i64: 16, 72>}, {pipeline_mode = #tpu.pipeline_mode<synchronous>, transform_indices = @transform_2, window_bounds = array<i64: 16, 1>}, {pipeline_mode = #tpu.pipeline_mode<synchronous>, transform_indices = @transform_3, window_bounds = array<i64: 16, 128>}]} {
    %c0 = arith.constant 0 : index
    %c0_0 = arith.constant 0 : index
    %0 = vector.load %arg2[%c0, %c0_0] : memref<16x72xf32, #tpu.memory_space<vmem>>, vector<16x72xf32>
    %c0_1 = arith.constant 0 : index
    %c0_2 = arith.constant 0 : index
    %1 = vector.load %arg1[%c0_1, %c0_2] : memref<72x128xf32, #tpu.memory_space<vmem>>, vector<72x128xf32>
    %cst = arith.constant dense<0.000000e+00> : vector<16x128xf32>
    %2 = tpu.matmul %0, %1, %cst {dimension_numbers = #tpu.dot_dimension_numbers<[1], [0], [0], [1], [0, 0, 1, 1], [], []>} : vector<16x72xf32>, vector<72x128xf32>, vector<16x128xf32> -> vector<16x128xf32>
    %c0_3 = arith.constant 0 : index
    %c0_4 = arith.constant 0 : index
    %3 = vector.load %arg3[%c0_3, %c0_4] : memref<16x1xf32, #tpu.memory_space<vmem>>, vector<16x1xf32>
    %4 = vector.broadcast %3 : vector<16x1xf32> to vector<16x128xf32>
    %5 = arith.addf %2, %4 : vector<16x128xf32>
    %cst_5 = arith.constant 0.000000e+00 : f32
    %6 = vector.broadcast %cst_5 : f32 to vector<16x128xf32>
    %7 = arith.maximumf %5, %6 : vector<16x128xf32>
    %c0_6 = arith.constant 0 : index
    %c0_7 = arith.constant 0 : index
    %8 = vector.load %arg4[%c0_6, %c0_7] : memref<16x128xf32, #tpu.memory_space<vmem>>, vector<16x128xf32>
    tpu.vector_store %arg4[%c0_6, %c0_7], %7 {strides = array<i32>} : memref<16x128xf32, #tpu.memory_space<vmem>>, vector<16x128xf32>,
    return
  }
  func.func @transform_0(%arg0: i32) -> (i32, i32) {
    %c0_i32 = arith.constant 0 : i32
    %c0_i32_0 = arith.constant 0 : i32
    %c0_i32_1 = arith.constant 0 : i32
    return %c0_i32, %c0_i32_0 : i32, i32
  }
  func.func @transform_1(%arg0: i32) -> (i32, i32) {
    %c0_i32 = arith.constant 0 : i32
    %c0_i32_0 = arith.constant 0 : i32
    %c0_i32_1 = arith.constant 0 : i32
    return %c0_i32, %c0_i32_0 : i32, i32
  }
  func.func @transform_2(%arg0: i32) -> (i32, i32) {
    %c0_i32 = arith.constant 0 : i32
    %c0_i32_0 = arith.constant 0 : i32
    %c0_i32_1 = arith.constant 0 : i32
    return %c0_i32, %c0_i32_0 : i32, i32
  }
  func.func @transform_3(%arg0: i32) -> (i32, i32) {
    %c0_i32 = arith.constant 0 : i32
    %c0_i32_0 = arith.constant 0 : i32
    %c0_i32_1 = arith.constant 0 : i32
    return %c0_i32, %c0_i32_0 : i32, i32
  }
}

module attributes {stable_mosaic.version = 11 : i64} {
  func.func @_fc_stack_kernel(%arg0: i32, %arg1: memref<2x1024xf32, #tpu.memory_space<vmem>>, %arg2: memref<1024x120xf32, #tpu.memory_space<vmem>>, %arg3: memref<1x120xf32, #tpu.memory_space<vmem>>, %arg4: memref<120x84xf32, #tpu.memory_space<vmem>>, %arg5: memref<1x84xf32, #tpu.memory_space<vmem>>, %arg6: memref<84x10xf32, #tpu.memory_space<vmem>>, %arg7: memref<1x10xf32, #tpu.memory_space<vmem>>, %arg8: memref<2x10xf32, #tpu.memory_space<vmem>>) attributes {dimension_semantics = [#tpu.dimension_semantics<arbitrary>], iteration_bounds = array<i64: 1>, scalar_prefetch = 0 : i64, scratch_operands = 0 : i64, tpu.core_type = #tpu.core_type<tc>, window_params = [{pipeline_mode = #tpu.pipeline_mode<synchronous>, transform_indices = @transform_0, window_bounds = array<i64: 2, 1024>}, {pipeline_mode = #tpu.pipeline_mode<synchronous>, transform_indices = @transform_1, window_bounds = array<i64: 1024, 120>}, {pipeline_mode = #tpu.pipeline_mode<synchronous>, transform_indices = @transform_2, window_bounds = array<i64: 1, 120>}, {pipeline_mode = #tpu.pipeline_mode<synchronous>, transform_indices = @transform_3, window_bounds = array<i64: 120, 84>}, {pipeline_mode = #tpu.pipeline_mode<synchronous>, transform_indices = @transform_4, window_bounds = array<i64: 1, 84>}, {pipeline_mode = #tpu.pipeline_mode<synchronous>, transform_indices = @transform_5, window_bounds = array<i64: 84, 10>}, {pipeline_mode = #tpu.pipeline_mode<synchronous>, transform_indices = @transform_6, window_bounds = array<i64: 1, 10>}, {pipeline_mode = #tpu.pipeline_mode<synchronous>, transform_indices = @transform_7, window_bounds = array<i64: 2, 10>}]} {
    %c0 = arith.constant 0 : index
    %c0_0 = arith.constant 0 : index
    %0 = vector.load %arg1[%c0, %c0_0] : memref<2x1024xf32, #tpu.memory_space<vmem>>, vector<2x1024xf32>
    %c0_1 = arith.constant 0 : index
    %c0_2 = arith.constant 0 : index
    %1 = vector.load %arg2[%c0_1, %c0_2] : memref<1024x120xf32, #tpu.memory_space<vmem>>, vector<1024x120xf32>
    %cst = arith.constant dense<0.000000e+00> : vector<2x120xf32>
    %2 = tpu.matmul %0, %1, %cst {dimension_numbers = #tpu.dot_dimension_numbers<[1], [0], [0], [1], [0, 0, 1, 1], [], []>} : vector<2x1024xf32>, vector<1024x120xf32>, vector<2x120xf32> -> vector<2x120xf32>
    %c0_3 = arith.constant 0 : index
    %c0_4 = arith.constant 0 : index
    %3 = vector.load %arg3[%c0_3, %c0_4] : memref<1x120xf32, #tpu.memory_space<vmem>>, vector<1x120xf32>
    %4 = vector.broadcast %3 : vector<1x120xf32> to vector<2x120xf32>
    %5 = arith.addf %2, %4 : vector<2x120xf32>
    %cst_5 = arith.constant 0.000000e+00 : f32
    %6 = vector.broadcast %cst_5 : f32 to vector<2x120xf32>
    %7 = arith.maximumf %5, %6 : vector<2x120xf32>
    %c0_6 = arith.constant 0 : index
    %c0_7 = arith.constant 0 : index
    %8 = vector.load %arg4[%c0_6, %c0_7] : memref<120x84xf32, #tpu.memory_space<vmem>>, vector<120x84xf32>
    %cst_8 = arith.constant dense<0.000000e+00> : vector<2x84xf32>
    %9 = tpu.matmul %7, %8, %cst_8 {dimension_numbers = #tpu.dot_dimension_numbers<[1], [0], [0], [1], [0, 0, 1, 1], [], []>} : vector<2x120xf32>, vector<120x84xf32>, vector<2x84xf32> -> vector<2x84xf32>
    %c0_9 = arith.constant 0 : index
    %c0_10 = arith.constant 0 : index
    %10 = vector.load %arg5[%c0_9, %c0_10] : memref<1x84xf32, #tpu.memory_space<vmem>>, vector<1x84xf32>
    %11 = vector.broadcast %10 : vector<1x84xf32> to vector<2x84xf32>
    %12 = arith.addf %9, %11 : vector<2x84xf32>
    %cst_11 = arith.constant 0.000000e+00 : f32
    %13 = vector.broadcast %cst_11 : f32 to vector<2x84xf32>
    %14 = arith.maximumf %12, %13 : vector<2x84xf32>
    %c0_12 = arith.constant 0 : index
    %c0_13 = arith.constant 0 : index
    %15 = vector.load %arg6[%c0_12, %c0_13] : memref<84x10xf32, #tpu.memory_space<vmem>>, vector<84x10xf32>
    %cst_14 = arith.constant dense<0.000000e+00> : vector<2x10xf32>
    %16 = tpu.matmul %14, %15, %cst_14 {dimension_numbers = #tpu.dot_dimension_numbers<[1], [0], [0], [1], [0, 0, 1, 1], [], []>} : vector<2x84xf32>, vector<84x10xf32>, vector<2x10xf32> -> vector<2x10xf32>
    %c0_15 = arith.constant 0 : index
    %c0_16 = arith.constant 0 : index
    %17 = vector.load %arg7[%c0_15, %c0_16] : memref<1x10xf32, #tpu.memory_space<vmem>>, vector<1x10xf32>
    %18 = vector.broadcast %17 : vector<1x10xf32> to vector<2x10xf32>
    %19 = arith.addf %16, %18 : vector<2x10xf32>
    %c0_17 = arith.constant 0 : index
    %c0_18 = arith.constant 0 : index
    %20 = vector.load %arg8[%c0_17, %c0_18] : memref<2x10xf32, #tpu.memory_space<vmem>>, vector<2x10xf32>
    tpu.vector_store %arg8[%c0_17, %c0_18], %19 {strides = array<i32>} : memref<2x10xf32, #tpu.memory_space<vmem>>, vector<2x10xf32>,
    return
  }
  func.func @transform_0(%arg0: i32) -> (i32, i32) {
    %c0_i32 = arith.constant 0 : i32
    %c0_i32_0 = arith.constant 0 : i32
    %c0_i32_1 = arith.constant 0 : i32
    return %c0_i32, %c0_i32_0 : i32, i32
  }
  func.func @transform_1(%arg0: i32) -> (i32, i32) {
    %c0_i32 = arith.constant 0 : i32
    %c0_i32_0 = arith.constant 0 : i32
    %c0_i32_1 = arith.constant 0 : i32
    return %c0_i32, %c0_i32_0 : i32, i32
  }
  func.func @transform_2(%arg0: i32) -> (i32, i32) {
    %c0_i32 = arith.constant 0 : i32
    %c0_i32_0 = arith.constant 0 : i32
    %c0_i32_1 = arith.constant 0 : i32
    return %c0_i32, %c0_i32_0 : i32, i32
  }
  func.func @transform_3(%arg0: i32) -> (i32, i32) {
    %c0_i32 = arith.constant 0 : i32
    %c0_i32_0 = arith.constant 0 : i32
    %c0_i32_1 = arith.constant 0 : i32
    return %c0_i32, %c0_i32_0 : i32, i32
  }
  func.func @transform_4(%arg0: i32) -> (i32, i32) {
    %c0_i32 = arith.constant 0 : i32
    %c0_i32_0 = arith.constant 0 : i32
    %c0_i32_1 = arith.constant 0 : i32
    return %c0_i32, %c0_i32_0 : i32, i32
  }
  func.func @transform_5(%arg0: i32) -> (i32, i32) {
    %c0_i32 = arith.constant 0 : i32
    %c0_i32_0 = arith.constant 0 : i32
    %c0_i32_1 = arith.constant 0 : i32
    return %c0_i32, %c0_i32_0 : i32, i32
  }
  func.func @transform_6(%arg0: i32) -> (i32, i32) {
    %c0_i32 = arith.constant 0 : i32
    %c0_i32_0 = arith.constant 0 : i32
    %c0_i32_1 = arith.constant 0 : i32
    return %c0_i32, %c0_i32_0 : i32, i32
  }
  func.func @transform_7(%arg0: i32) -> (i32, i32) {
    %c0_i32 = arith.constant 0 : i32
    %c0_i32_0 = arith.constant 0 : i32
    %c0_i32_1 = arith.constant 0 : i32
    return %c0_i32, %c0_i32_0 : i32, i32
  }
}

</mosaic_0001>

<bundles_post_ra>
// kernel: cnn_forward.4
= control target key start
LH: loop header
LB: loop body
LE: loop exit
PB: predicated region body
PF: predicated region fallthrough
CT: control target
= control target key end

     0   :  { %vm83_vm0 = vcmask 1042432   ;;  %v848_v3 = vmov 0.0   ;;  %v849_v8 = vmov 0   ;;  %vm850_vm1 = vmmov 1   ;;  %s1138_s0 = inlined_call_operand.vmem [shape: f32[27,2048], index: 0, kind: input, shape index: {}]   ;;  %s1139_s1 = inlined_call_operand.vmem [shape: f32[4,27], index: 1, kind: input, shape index: {}]   ;;  %s1140_s2 = inlined_call_operand.vmem [shape: f32[4,1], index: 2, kind: input, shape index: {}]   ;;  %s1141_s3 = inlined_call_operand.vmem [shape: f32[4,512], index: 3, kind: output, shape index: {}]  }
   0x1   :  { %v16_v0 = vld [vmem:[%s1138_s0 + $0x8] sm:$0xff]  ;;  %v18_v2 = vld [vmem:[%s1138_s0 + $0x18] sm:$0xff]  ;;  %196 = vmatprep.mubr.f32.mxu0 %v848_v3  ;;  %267 = vmatprep.mubr.f32.mxu1 %v848_v3  ;;  %v15_v6 = vld [vmem:[%s1138_s0] sm:$0xff]  ;;  %vm79_vm3 = vcmask 220160  }
   0x2   :  { %v32_v1 = vld [vmem:[%s1138_s0 + $0x88] sm:$0xff]  ;;  %v34_v5 = vld [vmem:[%s1138_s0 + $0x98] sm:$0xff]  ;;  %v31_v7 = vld [vmem:[%s1138_s0 + $0x80] sm:$0xff]  ;;  %847 = vset.pattern.permute.xlu0 %v849_v8 }
   0x3   :  { %v764_v4 = vpack.c.bf16 %v32_v1, %v16_v0  ;;  %v774_v9 = vpack.c.bf16 %v34_v5, %v18_v2  ;;  %v766_v10 = vpack.c.bf16 %v31_v7, %v15_v6  ;;  %v17_v11 = vld [vmem:[%s1138_s0 + $0x10] sm:$0xff]  ;;  %v48_v13 = vld [vmem:[%s1138_s0 + $0x108] sm:$0xff]  ;;  %vm904_vm2 = vmpackc.low %vm83_vm0, %vm850_vm1 }
   0x4   :  { %v33_v12 = vld [vmem:[%s1138_s0 + $0x90] sm:$0xff]  ;;  %v64_v15 = vld [vmem:[%s1138_s0 + $0x188] sm:$0x7]  ;;  %v50_v17 = vld [vmem:[%s1138_s0 + $0x118] sm:$0xff] }
   0x5   :  { %765 = vmatprep.subr.bf16.mxu0 %v764_v4  ;;  %v776_v14 = vpack.c.bf16 %v33_v12, %v17_v11  ;;  %775 = vmatprep.subr.bf16.mxu1 %v774_v9  ;;  %v768_v18 = vpack.c.bf16 %v64_v15, %v48_v13  ;;  %v66_v19 = vld [vmem:[%s1138_s0 + $0x198] sm:$0x7]  ;;  %v47_v20 = vld [vmem:[%s1138_s0 + $0x100] sm:$0xff]  ;;  %v49_v24 = vld [vmem:[%s1138_s0 + $0x110] sm:$0xff] }
   0x6   :  { %767 = vmatpush1.bf16.msra.mxu0 %v766_v10  ;;  %v63_v21 = vld [vmem:[%s1138_s0 + $0x180] sm:$0x7]  ;;  %v778_v22 = vpack.c.bf16 %v66_v19, %v50_v17  ;;  %v65_v25 = vld [vmem:[%s1138_s0 + $0x190] sm:$0x7]  ;;  %v20_v28 = vld [vmem:[%s1138_s0 + $0x28] sm:$0xff] }
   0x7   :  { %777 = vmatpush1.bf16.msra.mxu1 %v776_v14  ;;  %v771_v23 = vpack.c.bf16 %v63_v21, %v47_v20  ;;  %770 = vmatprep.subr.msk.bf16.mxu0 %vm904_vm2, %v768_v18  ;;  %v781_v26 = vpack.c.bf16 %v65_v25, %v49_v24  ;;  %v931_v27 = vld [vmem:[%s1139_s1] sm:$0xf]  ;;  %v36_v29 = vld [vmem:[%s1138_s0 + $0xa8] sm:$0xff]  ;;  %v22_v30 = vld [vmem:[%s1138_s0 + $0x38] sm:$0xff] }
   0x8   :  { %780 = vmatprep.subr.msk.bf16.mxu1 %vm904_vm2, %v778_v22  ;;  %v784_v31 = vpack.c.bf16 %v36_v29, %v20_v28  ;;  %v38_v32 = vld [vmem:[%s1138_s0 + $0xb8] sm:$0xff]  ;;  %v19_v33 = vld [vmem:[%s1138_s0 + $0x20] sm:$0xff]  ;;  %v21_v37 = vld [vmem:[%s1138_s0 + $0x30] sm:$0xff] }
   0x9   :  { %v35_v34 = vld [vmem:[%s1138_s0 + $0xa0] sm:$0xff]  ;;  %v794_v35 = vpack.c.bf16 %v38_v32, %v22_v30  ;;  %v37_v38 = vld [vmem:[%s1138_s0 + $0xb0] sm:$0xff]  ;;  %v52_v39 = vld [vmem:[%s1138_s0 + $0x128] sm:$0xff] }
   0xa   :  { %773 = vmatpush1.bf16.msk.msra.mxu0 %vm904_vm2, %v771_v23  ;;  %v786_v36 = vpack.c.bf16 %v35_v34, %v19_v33  ;;  %v796_v40 = vpack.c.bf16 %v37_v38, %v21_v37  ;;  %v68_v41 = vld [vmem:[%s1138_s0 + $0x1a8] sm:$0x7]  ;;  %v54_v42 = vld [vmem:[%s1138_s0 + $0x138] sm:$0xff]  ;;  %v51_v46 = vld [vmem:[%s1138_s0 + $0x120] sm:$0xff] }
   0xb   :  { %783 = vmatpush1.bf16.msk.msra.mxu1 %vm904_vm2, %v781_v26  ;;  %785 = vmatprep.subr.bf16.mxu0 %v784_v31  ;;  %v70_v43 = vld [vmem:[%s1138_s0 + $0x1b8] sm:$0x7]  ;;  %v788_v44 = vpack.c.bf16 %v68_v41, %v52_v39  ;;  %v67_v47 = vld [vmem:[%s1138_s0 + $0x1a0] sm:$0x7]  ;;  %v53_v48 = vld [vmem:[%s1138_s0 + $0x130] sm:$0xff] }
   0xc   :  { %795 = vmatprep.subr.bf16.mxu1 %v794_v35  ;;  %v798_v45 = vpack.c.bf16 %v70_v43, %v54_v42  ;;  %v69_v49 = vld [vmem:[%s1138_s0 + $0x1b0] sm:$0x7]  ;;  %v24_v50 = vld [vmem:[%s1138_s0 + $0x48] sm:$0xff]  ;;  %v791_v52 = vpack.c.bf16 %v67_v47, %v51_v46  ;;  %v26_v53 = vld [vmem:[%s1138_s0 + $0x58] sm:$0xff] }
   0xd   :  { %742 = vmatmul.mubr.msk.f32.vlgmr.msra.gmra.mrb[0].mxu0 %vm79_vm3, %v931_v27  ;;  %v40_v51 = vld [vmem:[%s1138_s0 + $0xc8] sm:$0xff]  ;;  %v42_v54 = vld [vmem:[%s1138_s0 + $0xd8] sm:$0xff]  ;;  %v801_v55 = vpack.c.bf16 %v69_v49, %v53_v48  ;;  %v23_v57 = vld [vmem:[%s1138_s0 + $0x40] sm:$0xff] }
   0xe   :  { %745 = vmatmul.mubr.msk.f32.vlgmr.msra.gmra.mrb[0].mxu1 %vm79_vm3, %v931_v27  ;;  %787 = vmatpush1.bf16.msra.mxu0 %v786_v36  ;;  %v804_v56 = vpack.c.bf16 %v40_v51, %v24_v50  ;;  %v39_v58 = vld [vmem:[%s1138_s0 + $0xc0] sm:$0xff]  ;;  %v25_v59 = vld [vmem:[%s1138_s0 + $0x50] sm:$0xff]  ;;  %v814_v60 = vpack.c.bf16 %v42_v54, %v26_v53  ;;  %v56_v62 = vld [vmem:[%s1138_s0 + $0x148] sm:$0xff] }
   0xf   :  { %797 = vmatpush1.bf16.msra.mxu1 %v796_v40  ;;  %790 = vmatprep.subr.msk.bf16.mxu0 %vm904_vm2, %v788_v44  ;;  %v41_v61 = vld [vmem:[%s1138_s0 + $0xd0] sm:$0xff]  ;;  %v72_v63 = vld [vmem:[%s1138_s0 + $0x1c8] sm:$0x7]  ;;  %v58_v0 = vld [vmem:[%s1138_s0 + $0x158] sm:$0xff]  ;;  %v806_v2 = vpack.c.bf16 %v39_v58, %v23_v57 }
  0x10   :  { %800 = vmatprep.subr.msk.bf16.mxu1 %vm904_vm2, %v798_v45  ;;  %338 = vmatprep.mubr.f32.mxu0 %v848_v3  ;;  %v74_v1 = vld [vmem:[%s1138_s0 + $0x1d8] sm:$0x7]  ;;  %v816_v4 = vpack.c.bf16 %v41_v61, %v25_v59  ;;  %v808_v5 = vpack.c.bf16 %v72_v63, %v56_v62  ;;  %v55_v6 = vld [vmem:[%s1138_s0 + $0x140] sm:$0xff]  ;;  %v57_v8 = vld [vmem:[%s1138_s0 + $0x150] sm:$0xff] }
  0x11   :  { %409 = vmatprep.mubr.f32.mxu1 %v848_v3  ;;  %v71_v7 = vld [vmem:[%s1138_s0 + $0x1c0] sm:$0x7]  ;;  %v818_v9 = vpack.c.bf16 %v74_v1, %v58_v0  ;;  %v73_v10 = vld [vmem:[%s1138_s0 + $0x1d0] sm:$0x7]  ;;  %v28_v11 = vld [vmem:[%s1138_s0 + $0x68] sm:$0xff] }
  0x12   :  { %793 = vmatpush1.bf16.msk.msra.mxu0 %vm904_vm2, %v791_v52  ;;  %v44_v12 = vld [vmem:[%s1138_s0 + $0xe8] sm:$0xff]  ;;  %v30_v13 = vld [vmem:[%s1138_s0 + $0x78] sm:$0xff]  ;;  %v811_v15 = vpack.c.bf16 %v71_v7, %v55_v6  ;;  %v27_v17 = vld [vmem:[%s1138_s0 + $0x60] sm:$0xff]  ;;  %v821_v18 = vpack.c.bf16 %v73_v10, %v57_v8 }
  0x13   :  { %803 = vmatpush1.bf16.msk.msra.mxu1 %vm904_vm2, %v801_v55  ;;  %805 = vmatprep.subr.bf16.mxu0 %v804_v56  ;;  %v46_v14 = vld [vmem:[%s1138_s0 + $0xf8] sm:$0xff]  ;;  %v824_v19 = vpack.c.bf16 %v44_v12, %v28_v11  ;;  %v43_v20 = vld [vmem:[%s1138_s0 + $0xe0] sm:$0xff]  ;;  %v29_v21 = vld [vmem:[%s1138_s0 + $0x70] sm:$0xff] }
  0x14   :  { %815 = vmatprep.subr.bf16.mxu1 %v814_v60  ;;  %v45_v22 = vld [vmem:[%s1138_s0 + $0xf0] sm:$0xff]  ;;  %v834_v23 = vpack.c.bf16 %v46_v14, %v30_v13  ;;  %v60_v24 = vld [vmem:[%s1138_s0 + $0x168] sm:$0xff]  ;;  %v712_v26 = vld [vmem:[%s1140_s2] sm:$0xf]  ;;  %v826_v30 = vpack.c.bf16 %v43_v20, %v27_v17 }
  0x15   :  { %748 = vmatmul.mubr.msk.f32.vlgmr.msra.gmra.mrb[2].mxu0 %vm79_vm3, %v931_v27  ;;  %v76_v25 = vld [vmem:[%s1138_s0 + $0x1e8] sm:$0x7]  ;;  %v62_v28 = vld [vmem:[%s1138_s0 + $0x178] sm:$0xff]  ;;  %715 = vperm.xlu0 %847, %v712_v26   ;;  %v836_v31 = vpack.c.bf16 %v45_v22, %v29_v21  ;;  %v59_v33 = vld [vmem:[%s1138_s0 + $0x160] sm:$0xff] }
  0x16   :  { %751 = vmatmul.mubr.msk.f32.vlgmr.msra.gmra.mrb[2].mxu1 %vm79_vm3, %v931_v27  ;;  %807 = vmatpush1.bf16.msra.mxu0 %v806_v2  ;;  %v78_v29 = vld [vmem:[%s1138_s0 + $0x1f8] sm:$0x7]  ;;  %v828_v32 = vpack.c.bf16 %v76_v25, %v60_v24  ;;  %v75_v34 = vld [vmem:[%s1138_s0 + $0x1e0] sm:$0x7]  ;;  %v61_v36 = vld [vmem:[%s1138_s0 + $0x170] sm:$0xff] }
  0x17   :  { %817 = vmatpush1.bf16.msra.mxu1 %v816_v4  ;;  %810 = vmatprep.subr.msk.bf16.mxu0 %vm904_vm2, %v808_v5  ;;  %v838_v35 = vpack.c.bf16 %v78_v29, %v62_v28  ;;  %v77_v37 = vld [vmem:[%s1138_s0 + $0x1f0] sm:$0x7]  ;;  %v831_v38 = vpack.c.bf16 %v75_v34, %v59_v33 }
  0x18   :  { %820 = vmatprep.subr.msk.bf16.mxu1 %vm904_vm2, %v818_v9  ;;  %480 = vmatprep.mubr.f32.mxu0 %v848_v3  ;;  %v841_v39 = vpack.c.bf16 %v77_v37, %v61_v36 }
  0x19   :  { %551 = vmatprep.mubr.f32.mxu1 %v848_v3 }
  0x1a   :  { %813 = vmatpush1.bf16.msk.msra.mxu0 %vm904_vm2, %v811_v15 }
  0x1b   :  { %823 = vmatpush1.bf16.msk.msra.mxu1 %vm904_vm2, %v821_v18  ;;  %825 = vmatprep.subr.bf16.mxu0 %v824_v19 }
  0x1c   :  { %835 = vmatprep.subr.bf16.mxu1 %v834_v23 }
  0x1d   :  { %754 = vmatmul.mubr.msk.f32.vlgmr.msra.gmra.mrb[4].mxu0 %vm79_vm3, %v931_v27 }
  0x1e   :  { %757 = vmatmul.mubr.msk.f32.vlgmr.msra.gmra.mrb[4].mxu1 %vm79_vm3, %v931_v27  ;;  %827 = vmatpush1.bf16.msra.mxu0 %v826_v30 }
  0x1f   :  { %837 = vmatpush1.bf16.msra.mxu1 %v836_v31  ;;  %830 = vmatprep.subr.msk.bf16.mxu0 %vm904_vm2, %v828_v32 }
  0x20   :  { %840 = vmatprep.subr.msk.bf16.mxu1 %vm904_vm2, %v838_v35  ;;  %622 = vmatprep.mubr.f32.mxu0 %v848_v3 }
  0x21   :  { %693 = vmatprep.mubr.f32.mxu1 %v848_v3 }
  0x22   :  { %833 = vmatpush1.bf16.msk.msra.mxu0 %vm904_vm2, %v831_v38 }
  0x23   :  { %843 = vmatpush1.bf16.msk.msra.mxu1 %vm904_vm2, %v841_v39 }
  0x25   :  { %760 = vmatmul.mubr.msk.f32.vlgmr.msra.gmra.mrb[6].mxu0 %vm79_vm3, %v931_v27 }
  0x26   :  { %763 = vmatmul.mubr.msk.f32.vlgmr.msra.gmra.mrb[6].mxu1 %vm79_vm3, %v931_v27 }
  0x94   :  { %v716_v58 = vpop.permute.xlu0 %715 }
  0xe0   :  { %v198_v40 = vpop.f32.mrb[0].mxu0 }
  0xe1   :  { %v269_v41 = vpop.f32.mrb[0].mxu1  ;;  %v200_v42 = vpop.f32.mrb[1].mxu0 }
  0xe2   :  { %v271_v43 = vpop.f32.mrb[1].mxu1 }
  0xe8   :  { %v340_v44 = vpop.f32.mrb[2].mxu0 }
  0xe9   :  { %v700_v45 = vmax.f32 %v198_v40, %v340_v44  ;;  %v411_v46 = vpop.f32.mrb[2].mxu1  ;;  %v342_v3 = vpop.f32.mrb[3].mxu0 }
  0xea   :  { %v702_v47 = vmax.f32 %v269_v41, %v411_v46  ;;  %v701_v48 = vmax.f32 %v200_v42, %v342_v3  ;;  %v413_v49 = vpop.f32.mrb[3].mxu1 }
  0xeb   :  { %v703_v50 = vmax.f32 %v271_v43, %v413_v49 }
  0xf0   :  { %v482_v16 = vpop.f32.mrb[4].mxu0 }
  0xf1   :  { %v704_v51 = vmax.f32 %v700_v45, %v482_v16  ;;  %v553_v52 = vpop.f32.mrb[4].mxu1  ;;  %v484_v53 = vpop.f32.mrb[5].mxu0 }
  0xf2   :  { %v706_v54 = vmax.f32 %v702_v47, %v553_v52  ;;  %v705_v55 = vmax.f32 %v701_v48, %v484_v53  ;;  %v555_v56 = vpop.f32.mrb[5].mxu1 }
  0xf3   :  { %v707_v27 = vmax.f32 %v703_v50, %v555_v56 }
  0xf8   :  { %v624_v57 = vpop.f32.mrb[6].mxu0 }
  0xf9   :  { %v708_v59 = vmax.f32 %v704_v51, %v624_v57  ;;  %v695_v60 = vpop.f32.mrb[6].mxu1  ;;  %v626_v61 = vpop.f32.mrb[7].mxu0 }
  0xfa   :  { %v710_v62 = vmax.f32 %v706_v54, %v695_v60  ;;  %v709_v63 = vmax.f32 %v705_v55, %v626_v61  ;;  %v697_v0 = vpop.f32.mrb[7].mxu1 }
  0xfb   :  { %v711_v1 = vmax.f32 %v707_v27, %v697_v0  ;;  %v718_v2 = vadd.f32 %v716_v58, %v708_v59 }
  0xfc   :  { %v719_v4 = vadd.f32 %v716_v58, %v709_v63  ;;  %v720_v5 = vadd.f32 %v716_v58, %v710_v62 }
  0xfd   :  { %v721_v6 = vadd.f32 %v716_v58, %v711_v1  ;;  %v722_v7 = vmax.f32 %v718_v2, 0.0 }
  0xfe   :  { %v723_v8 = vmax.f32 %v719_v4, 0.0  ;;  %v724_v9 = vmax.f32 %v720_v5, 0.0 }
  0xff   :  { %v725_v10 = vmax.f32 %v721_v6, 0.0 }
 0x100   :  { %v730_v11 = vcombine.low %v722_v7, %v723_v8 }
 0x101   :  { %v731_v12 = vcombine.low %v724_v9, %v725_v10 }
 0x102   :  { %734 = vst [vmem:[%s1141_s3] sm:$0xff] %v730_v11 }
 0x103   :  { %735 = vst [vmem:[%s1141_s3 + $0x8] sm:$0xff] %v731_v12 }

// kernel: cnn_forward.5
= control target key start
LH: loop header
LB: loop body
LE: loop exit
PB: predicated region body
PF: predicated region fallthrough
CT: control target
= control target key end

     0   :  { %v235_v3 = vmov 0.0   ;;  %v236_v8 = vmov 0   ;;  %vm39_vm0 = vcmask 1043456   ;;  %vm35_vm1 = vcmask 293888   ;;  %s330_s0 = inlined_call_operand.vmem [shape: f32[36,512], index: 0, kind: input, shape index: {}]   ;;  %s331_s2 = inlined_call_operand.vmem [shape: f32[8,1], index: 2, kind: input, shape index: {}]   ;;  %s332_s1 = inlined_call_operand.vmem [shape: f32[8,36], index: 1, kind: input, shape index: {}]   ;;  %s333_s3 = inlined_call_operand.vmem [shape: f32[8,128], index: 3, kind: output, shape index: {}]  }
   0x1   :  { %v16_v0 = vld [vmem:[%s330_s0 + $0x8] sm:$0xff]  ;;  %v15_v2 = vld [vmem:[%s330_s0] sm:$0xff]  ;;  %116 = vmatprep.mubr.f32.mxu0 %v235_v3  ;;  %187 = vmatprep.mubr.f32.mxu1 %v235_v3  ;;  %v18_v6 = vld [vmem:[%s330_s0 + $0x18] sm:$0xff] }
   0x2   :  { %v20_v1 = vld [vmem:[%s330_s0 + $0x28] sm:$0xff]  ;;  %v19_v5 = vld [vmem:[%s330_s0 + $0x20] sm:$0xff]  ;;  %v22_v7 = vld [vmem:[%s330_s0 + $0x38] sm:$0xff]  ;;  %234 = vset.pattern.permute.xlu0 %v236_v8 }
   0x3   :  { %v216_v4 = vpack.c.bf16 %v20_v1, %v16_v0  ;;  %v218_v9 = vpack.c.bf16 %v19_v5, %v15_v2  ;;  %v224_v10 = vpack.c.bf16 %v22_v7, %v18_v6  ;;  %v17_v11 = vld [vmem:[%s330_s0 + $0x10] sm:$0xff]  ;;  %v24_v13 = vld [vmem:[%s330_s0 + $0x48] sm:$0xff]  ;;  %v23_v16 = vld [vmem:[%s330_s0 + $0x40] sm:$0xff] }
   0x4   :  { %v21_v12 = vld [vmem:[%s330_s0 + $0x30] sm:$0xff]  ;;  %v28_v15 = vld [vmem:[%s330_s0 + $0x68] sm:$0xff]  ;;  %v27_v17 = vld [vmem:[%s330_s0 + $0x60] sm:$0xff] }
   0x5   :  { %217 = vmatprep.subr.bf16.mxu0 %v216_v4  ;;  %v226_v14 = vpack.c.bf16 %v21_v12, %v17_v11  ;;  %225 = vmatprep.subr.bf16.mxu1 %v224_v10  ;;  %v220_v18 = vpack.c.bf16 %v28_v15, %v24_v13  ;;  %v222_v19 = vpack.c.bf16 %v27_v17, %v23_v16  ;;  %v26_v20 = vld [vmem:[%s330_s0 + $0x58] sm:$0xff]  ;;  %v25_v22 = vld [vmem:[%s330_s0 + $0x50] sm:$0xff]  ;;  %v32_v26 = vld [vmem:[%s330_s0 + $0x88] sm:$0xf] }
   0x6   :  { %219 = vmatpush1.bf16.msra.mxu0 %v218_v9  ;;  %v30_v21 = vld [vmem:[%s330_s0 + $0x78] sm:$0xff]  ;;  %v29_v24 = vld [vmem:[%s330_s0 + $0x70] sm:$0xff]  ;;  %v197_v28 = vld [vmem:[%s331_s2] sm:$0xff] }
   0x7   :  { %227 = vmatpush1.bf16.msra.mxu1 %v226_v14  ;;  %v228_v23 = vpack.c.bf16 %v30_v21, %v26_v20  ;;  %221 = vmatprep.subr.bf16.mxu0 %v220_v18  ;;  %v230_v25 = vpack.c.bf16 %v29_v24, %v25_v22  ;;  %v34_v27 = vld [vmem:[%s330_s0 + $0x98] sm:$0xf]  ;;  %v31_v29 = vld [vmem:[%s330_s0 + $0x80] sm:$0xf]  ;;  %v33_v31 = vld [vmem:[%s330_s0 + $0x90] sm:$0xf] }
   0x8   :  { %200 = vperm.xlu0 %234, %v197_v28   ;;  %v14_v30 = vld [vmem:[%s332_s1] sm:$0xff] }
   0x9   :  { %229 = vmatprep.subr.bf16.mxu1 %v228_v23 }
   0xa   :  { %223 = vmatpush1.bf16.msra.mxu0 %v222_v19 }
   0xb   :  { %231 = vmatpush1.bf16.msra.mxu1 %v230_v25  ;;  %210 = vmatprep.subr.msk.mxu0 %vm39_vm0, %v32_v26 }
   0xc   :  { %213 = vmatprep.subr.msk.mxu1 %vm39_vm0, %v34_v27 }
   0xe   :  { %211 = vmatpush1.msk.msra.mxu0 %vm39_vm0, %v31_v29 }
   0xf   :  { %212 = vmatmul.mubr.msk.f32.vlgmr.msra.gmra.mrb[0].mxu0 %vm35_vm1, %v14_v30  ;;  %214 = vmatpush1.msk.msra.mxu1 %vm39_vm0, %v33_v31 }
  0x10   :  { %215 = vmatmul.mubr.msk.f32.vlgmr.msra.gmra.mrb[0].mxu1 %vm35_vm1, %v14_v30 }
  0x87   :  { %v201_v38 = vpop.permute.xlu0 %200 }
  0xe2   :  { %v118_v32 = vpop.f32.mrb[0].mxu0 }
  0xe3   :  { %v120_v33 = vpop.f32.mrb[1].mxu0  ;;  %v189_v34 = vpop.f32.mrb[0].mxu1 }
  0xe4   :  { %v194_v35 = vmax.f32 %v118_v32, %v120_v33  ;;  %v191_v36 = vpop.f32.mrb[1].mxu1 }
  0xe6   :  { %v195_v37 = vmax.f32 %v194_v35, %v189_v34 }
  0xe8   :  { %v196_v39 = vmax.f32 %v195_v37, %v191_v36 }
  0xea   :  { %v203_v40 = vadd.f32 %v201_v38, %v196_v39 }
  0xec   :  { %v204_v41 = vmax.f32 %v203_v40, 0.0 }
  0xee   :  { %205 = vst [vmem:[%s333_s3] sm:$0xff] %v204_v41 }

// kernel: cnn_forward.6
= control target key start
LH: loop header
LB: loop body
LE: loop exit
PB: predicated region body
PF: predicated region fallthrough
CT: control target
= control target key end

     0   :  { %v179_v3 = vmov 0   ;;  %vm37_vm0 = vcmask 588800   ;;  %s247_s0 = inlined_call_operand.vmem [shape: f32[72,128], index: 0, kind: input, shape index: {}]   ;;  %s248_s1 = inlined_call_operand.vmem [shape: f32[16,72], index: 1, kind: input, shape index: {}]   ;;  %s249_s2 = inlined_call_operand.vmem [shape: f32[16,1], index: 2, kind: input, shape index: {}]   ;;  %s250_s3 = inlined_call_operand.vmem [shape: f32[16,128], index: 3, kind: output, shape index: {}]  }
   0x1   :  { %v16_v0 = vld [vmem:[%s247_s0] sm:$0xff]  ;;  %v17_v1 = vld [vmem:[%s247_s0 + $0x8] sm:$0xff]  ;;  %v18_v2 = vld [vmem:[%s247_s0 + $0x10] sm:$0xff]  ;;  %178 = vset.pattern.permute.xlu0 %v179_v3 }
   0x2   :  { %v161_v4 = vpack.c.bf16 %v17_v1, %v16_v0  ;;  %v19_v5 = vld [vmem:[%s247_s0 + $0x18] sm:$0xff]  ;;  %v20_v7 = vld [vmem:[%s247_s0 + $0x20] sm:$0xff]  ;;  %v21_v8 = vld [vmem:[%s247_s0 + $0x28] sm:$0xff] }
   0x3   :  { %v165_v6 = vpack.c.bf16 %v19_v5, %v18_v2  ;;  %v14_v9 = vld [vmem:[%s248_s1] sm:$0xff]  ;;  %v169_v11 = vpack.c.bf16 %v21_v8, %v20_v7  ;;  %v22_v12 = vld [vmem:[%s247_s0 + $0x30] sm:$0xff]  ;;  %v23_v13 = vld [vmem:[%s247_s0 + $0x38] sm:$0xff] }
   0x4   :  { %162 = vmatprep.subr.bf16.mxu0 %v161_v4  ;;  %v25_v10 = vld [vmem:[%s249_s2] sm:$0xff]  ;;  %158 = vmatprep.mubr.msk.f32.mxu0 %vm37_vm0, %v14_v9  ;;  %v26_v14 = vld [vmem:[%s249_s2 + $0x8] sm:$0xff]  ;;  %v173_v15 = vpack.c.bf16 %v23_v13, %v22_v12 }
   0x5   :  { %164 = vmatpush3.bf16.msra.mxu0 %v161_v4  ;;  %29 = vperm.xlu0 %178, %v25_v10   ;;  %v24_v16 = vld [vmem:[%s247_s0 + $0x40] sm:$0xff]  ;;  %v15_v17 = vld [vmem:[%s248_s1 + $0x8] sm:$0xff] }
   0x6   :  { %166 = vmatprep.subr.bf16.mxu0 %v165_v6 }
   0x9   :  { %168 = vmatpush3.bf16.msra.mxu0 %v165_v6  ;;  %34 = vperm.xlu0 %178, %v26_v14  }
   0xa   :  { %170 = vmatprep.subr.bf16.mxu0 %v169_v11 }
   0xd   :  { %172 = vmatpush3.bf16.msra.mxu0 %v169_v11 }
   0xe   :  { %174 = vmatprep.subr.bf16.mxu0 %v173_v15 }
  0x11   :  { %176 = vmatpush3.bf16.msra.mxu0 %v173_v15 }
  0x12   :  { %156 = vmatprep.subr.mxu0 %v24_v16 }
  0x15   :  { %157 = vmatpush3.msra.mxu0 %v24_v16 }
  0x16   :  { %159 = vmatmul.mubr.msk.f32.vlgmr.msra.gmra.mrb[0].mxu0 %vm37_vm0, %v15_v17 }
  0x84   :  { %v30_v18 = vpop.permute.xlu0 %29 }
  0x88   :  { %v35_v19 = vpop.permute.xlu0 %34 }
  0xe9   :  { %v160_v20 = vpop.f32.mrb[0].mxu0 }
  0xea   :  { %v116_v21 = vadd.f32 %v160_v20, %v35_v19  ;;  %v110_v22 = vpop.f32.mrb[1].mxu0 }
  0xeb   :  { %v111_v23 = vadd.f32 %v110_v22, %v30_v18 }
  0xec   :  { %v120_v24 = vmax.f32 %v116_v21, 0.0 }
  0xed   :  { %v119_v25 = vmax.f32 %v111_v23, 0.0 }
  0xee   :  { %122 = vst [vmem:[%s250_s3 + $0x8] sm:$0xff] %v120_v24 }
  0xef   :  { %121 = vst [vmem:[%s250_s3] sm:$0xff] %v119_v25 }

// kernel: cnn_forward.7
= control target key start
LH: loop header
LB: loop body
LE: loop exit
PB: predicated region body
PF: predicated region fallthrough
CT: control target
= control target key end

     0   :  { %v1125_v47 = vmov 1983009808   ;;  %v170_v49 = vlaneseq  ;;  %s1670_s0 = inlined_call_operand.vmem [shape: f32[2,1024], index: 0, kind: input, shape index: {}]   ;;  %s1671_s1 = inlined_call_operand.vmem [shape: f32[1024,120], index: 1, kind: input, shape index: {}]   ;;  %s1672_s2 = inlined_call_operand.vmem [shape: f32[1,120], index: 2, kind: input, shape index: {}]   ;;  %s1673_s3 = inlined_call_operand.vmem [shape: f32[120,84], index: 3, kind: input, shape index: {}]   ;;  %s1674_s4 = inlined_call_operand.vmem [shape: f32[1,84], index: 4, kind: input, shape index: {}]   ;;  %s1675_s5 = inlined_call_operand.vmem [shape: f32[84,10], index: 5, kind: input, shape index: {}]   ;;  %s1676_s6 = inlined_call_operand.vmem [shape: f32[1,10], index: 6, kind: input, shape index: {}]   ;;  %s1677_s7 = inlined_call_operand.hbm [shape: f32[2,10], index: 7, kind: output, shape index: {}]  }
   0x1   :  { %v45_v0 = vld [vmem:[%s1671_s1 + $0x80] sm:$0xff]  ;;  %v46_v1 = vld [vmem:[%s1671_s1 + $0x88] sm:$0xff]  ;;  %v47_v11 = vld [vmem:[%s1671_s1 + $0x90] sm:$0xff]  ;;  %v168_v48 = vunpack.c.l.s4 %v1125_v47 }
   0x2   :  { %v29_v2 = vld [vmem:[%s1671_s1] sm:$0xff]  ;;  %v930_v3 = vpack.c.bf16 %v46_v1, %v45_v0  ;;  %v30_v4 = vld [vmem:[%s1671_s1 + $0x8] sm:$0xff]  ;;  %v48_v13 = vld [vmem:[%s1671_s1 + $0x98] sm:$0xff]  ;;  %v171_v0 = vshrl.u32 %v170_v49, 7 }
   0x3   :  { %v77_v5 = vld [vmem:[%s1671_s1 + $0x180] sm:$0xff]  ;;  %v78_v6 = vld [vmem:[%s1671_s1 + $0x188] sm:$0xff]  ;;  %v932_v7 = vpack.c.bf16 %v30_v4, %v29_v2  ;;  %v31_v14 = vld [vmem:[%s1671_s1 + $0x10] sm:$0xff]  ;;  %v934_v16 = vpack.c.bf16 %v48_v13, %v47_v11  ;;  %v169_v63 = vunpack.c.0.s8 %v168_v48 }
   0x4   :  { %v962_v8 = vpack.c.bf16 %v78_v6, %v77_v5  ;;  %v61_v9 = vld [vmem:[%s1671_s1 + $0x100] sm:$0xff]  ;;  %v62_v10 = vld [vmem:[%s1671_s1 + $0x108] sm:$0xff]  ;;  %931 = vmatprep.subr.bf16.mxu0 %v930_v3  ;;  %v32_v15 = vld [vmem:[%s1671_s1 + $0x18] sm:$0xff] }
   0x5   :  { %v964_v12 = vpack.c.bf16 %v62_v10, %v61_v9  ;;  %933 = vmatpush3.bf16.msra.mxu0 %v932_v7  ;;  %v936_v17 = vpack.c.bf16 %v32_v15, %v31_v14  ;;  %v79_v18 = vld [vmem:[%s1671_s1 + $0x190] sm:$0xff]  ;;  %v80_v19 = vld [vmem:[%s1671_s1 + $0x198] sm:$0xff]  ;;  %v49_v23 = vld [vmem:[%s1671_s1 + $0xa0] sm:$0xff]  ;;  %v1320_v13 = vsub.s32 %v169_v63, %v171_v0 }
   0x6   :  { %963 = vmatprep.subr.bf16.mxu1 %v962_v8  ;;  %v63_v20 = vld [vmem:[%s1671_s1 + $0x110] sm:$0xff]  ;;  %v966_v21 = vpack.c.bf16 %v80_v19, %v79_v18  ;;  %v64_v22 = vld [vmem:[%s1671_s1 + $0x118] sm:$0xff]  ;;  %v50_v24 = vld [vmem:[%s1671_s1 + $0xa8] sm:$0xff]  ;;  %935 = vmatprep.subr.bf16.mxu0 %v934_v16 }
   0x7   :  { %965 = vmatpush3.bf16.msra.mxu1 %v964_v12  ;;  %v968_v25 = vpack.c.bf16 %v64_v22, %v63_v20  ;;  %v938_v26 = vpack.c.bf16 %v50_v24, %v49_v23  ;;  %v33_v27 = vld [vmem:[%s1671_s1 + $0x20] sm:$0xff]  ;;  %v34_v28 = vld [vmem:[%s1671_s1 + $0x28] sm:$0xff]  ;;  %v51_v35 = vld [vmem:[%s1671_s1 + $0xb0] sm:$0xff] }
   0x8   :  { %v81_v29 = vld [vmem:[%s1671_s1 + $0x1a0] sm:$0xff]  ;;  %967 = vmatprep.subr.bf16.mxu1 %v966_v21  ;;  %v82_v30 = vld [vmem:[%s1671_s1 + $0x1a8] sm:$0xff]  ;;  %v940_v33 = vpack.c.bf16 %v34_v28, %v33_v27  ;;  %v52_v36 = vld [vmem:[%s1671_s1 + $0xb8] sm:$0xff] }
   0x9   :  { %v65_v31 = vld [vmem:[%s1671_s1 + $0x120] sm:$0xff]  ;;  %v66_v32 = vld [vmem:[%s1671_s1 + $0x128] sm:$0xff]  ;;  %937 = vmatpush3.bf16.msra.mxu0 %v936_v17  ;;  %v970_v34 = vpack.c.bf16 %v82_v30, %v81_v29  ;;  %v35_v37 = vld [vmem:[%s1671_s1 + $0x30] sm:$0xff]  ;;  %v942_v39 = vpack.c.bf16 %v52_v36, %v51_v35 }
   0xa   :  { %939 = vmatprep.subr.bf16.mxu0 %v938_v26  ;;  %v972_v38 = vpack.c.bf16 %v66_v32, %v65_v31  ;;  %v36_v40 = vld [vmem:[%s1671_s1 + $0x38] sm:$0xff]  ;;  %v83_v41 = vld [vmem:[%s1671_s1 + $0x1b0] sm:$0xff]  ;;  %v53_v46 = vld [vmem:[%s1671_s1 + $0xc0] sm:$0xff] }
   0xb   :  { %969 = vmatpush3.bf16.msra.mxu1 %v968_v25  ;;  %v84_v42 = vld [vmem:[%s1671_s1 + $0x1b8] sm:$0xff]  ;;  %v67_v44 = vld [vmem:[%s1671_s1 + $0x130] sm:$0xff]  ;;  %v54_v50 = vld [vmem:[%s1671_s1 + $0xc8] sm:$0xff]  ;;  %v944_v51 = vpack.c.bf16 %v36_v40, %v35_v37 }
   0xc   :  { %971 = vmatprep.subr.bf16.mxu1 %v970_v34  ;;  %v974_v43 = vpack.c.bf16 %v84_v42, %v83_v41  ;;  %v68_v45 = vld [vmem:[%s1671_s1 + $0x138] sm:$0xff]  ;;  %v85_v52 = vld [vmem:[%s1671_s1 + $0x1c0] sm:$0xff]  ;;  %v86_v53 = vld [vmem:[%s1671_s1 + $0x1c8] sm:$0xff]  ;;  %v946_v55 = vpack.c.bf16 %v54_v50, %v53_v46 }
   0xd   :  { %941 = vmatpush3.bf16.msra.mxu0 %v940_v33  ;;  %v976_v54 = vpack.c.bf16 %v68_v45, %v67_v44  ;;  %v37_v56 = vld [vmem:[%s1671_s1 + $0x40] sm:$0xff]  ;;  %v38_v57 = vld [vmem:[%s1671_s1 + $0x48] sm:$0xff]  ;;  %v978_v59 = vpack.c.bf16 %v86_v53, %v85_v52  ;;  %v55_v61 = vld [vmem:[%s1671_s1 + $0xd0] sm:$0xff] }
   0xe   :  { %943 = vmatprep.subr.bf16.mxu0 %v942_v39  ;;  %v69_v58 = vld [vmem:[%s1671_s1 + $0x140] sm:$0xff]  ;;  %v70_v60 = vld [vmem:[%s1671_s1 + $0x148] sm:$0xff]  ;;  %v56_v62 = vld [vmem:[%s1671_s1 + $0xd8] sm:$0xff]  ;;  %v948_v3 = vpack.c.bf16 %v38_v57, %v37_v56 }
   0xf   :  { %973 = vmatpush3.bf16.msra.mxu1 %v972_v38  ;;  %v87_v1 = vld [vmem:[%s1671_s1 + $0x1d0] sm:$0xff]  ;;  %v88_v2 = vld [vmem:[%s1671_s1 + $0x1d8] sm:$0xff]  ;;  %v980_v4 = vpack.c.bf16 %v70_v60, %v69_v58  ;;  %v950_v5 = vpack.c.bf16 %v56_v62, %v55_v61  ;;  %v57_v11 = vld [vmem:[%s1671_s1 + $0xe0] sm:$0xff] }
  0x10   :  { %975 = vmatprep.subr.bf16.mxu1 %v974_v43  ;;  %v39_v6 = vld [vmem:[%s1671_s1 + $0x50] sm:$0xff]  ;;  %v40_v7 = vld [vmem:[%s1671_s1 + $0x58] sm:$0xff]  ;;  %v982_v9 = vpack.c.bf16 %v88_v2, %v87_v1  ;;  %v58_v12 = vld [vmem:[%s1671_s1 + $0xe8] sm:$0xff] }
  0x11   :  { %945 = vmatpush3.bf16.msra.mxu0 %v944_v51  ;;  %v71_v8 = vld [vmem:[%s1671_s1 + $0x150] sm:$0xff]  ;;  %v72_v10 = vld [vmem:[%s1671_s1 + $0x158] sm:$0xff]  ;;  %v89_v14 = vld [vmem:[%s1671_s1 + $0x1e0] sm:$0xff]  ;;  %v952_v16 = vpack.c.bf16 %v40_v7, %v39_v6  ;;  %v954_v19 = vpack.c.bf16 %v58_v12, %v57_v11 }
  0x12   :  { %947 = vmatprep.subr.bf16.mxu0 %v946_v55  ;;  %v90_v15 = vld [vmem:[%s1671_s1 + $0x1e8] sm:$0xff]  ;;  %v41_v17 = vld [vmem:[%s1671_s1 + $0x60] sm:$0xff]  ;;  %v984_v18 = vpack.c.bf16 %v72_v10, %v71_v8  ;;  %v59_v25 = vld [vmem:[%s1671_s1 + $0xf0] sm:$0xff] }
  0x13   :  { %977 = vmatpush3.bf16.msra.mxu1 %v976_v54  ;;  %v42_v20 = vld [vmem:[%s1671_s1 + $0x68] sm:$0xff]  ;;  %v73_v21 = vld [vmem:[%s1671_s1 + $0x160] sm:$0xff]  ;;  %v986_v23 = vpack.c.bf16 %v90_v15, %v89_v14  ;;  %v60_v26 = vld [vmem:[%s1671_s1 + $0xf8] sm:$0xff] }
  0x14   :  { %979 = vmatprep.subr.bf16.mxu1 %v978_v59  ;;  %v27_v22 = vld [vmem:[%s1670_s0] sm:$0xff]  ;;  %v74_v24 = vld [vmem:[%s1671_s1 + $0x168] sm:$0xff]  ;;  %v91_v29 = vld [vmem:[%s1671_s1 + $0x1f0] sm:$0xff]  ;;  %v956_v31 = vpack.c.bf16 %v42_v20, %v41_v17  ;;  %v958_v35 = vpack.c.bf16 %v60_v26, %v59_v25 }
  0x15   :  { %949 = vmatpush3.bf16.msra.mxu0 %v948_v3  ;;  %v173_v27 = vrot.slane %v27_v22, %v1320_v13  ;;  %v166_v28 = vcombine.high %v27_v22, %v27_v22  ;;  %v92_v30 = vld [vmem:[%s1671_s1 + $0x1f8] sm:$0xff]  ;;  %v988_v34 = vpack.c.bf16 %v74_v24, %v73_v21  ;;  %v43_v36 = vld [vmem:[%s1671_s1 + $0x70] sm:$0xff]  ;;  %v109_v41 = vld [vmem:[%s1671_s1 + $0x280] sm:$0xff] }
  0x16   :  { %951 = vmatprep.subr.bf16.mxu0 %v950_v5  ;;  %v44_v37 = vld [vmem:[%s1671_s1 + $0x78] sm:$0xff]  ;;  %v75_v38 = vld [vmem:[%s1671_s1 + $0x170] sm:$0xff]  ;;  %v990_v39 = vpack.c.bf16 %v92_v30, %v91_v29  ;;  %v110_v42 = vld [vmem:[%s1671_s1 + $0x288] sm:$0xff] }
  0x17   :  { %981 = vmatpush3.bf16.msra.mxu1 %v980_v4  ;;  %v181_v32 = vcombine.high %v173_v27, %v173_v27  ;;  %v180_v33 = vrot.slane %v166_v28, %v1320_v13  ;;  %v76_v40 = vld [vmem:[%s1671_s1 + $0x178] sm:$0xff]  ;;  %v141_v44 = vld [vmem:[%s1671_s1 + $0x380] sm:$0xff]  ;;  %v142_v45 = vld [vmem:[%s1671_s1 + $0x388] sm:$0xff]  ;;  %v960_v46 = vpack.c.bf16 %v44_v37, %v43_v36  ;;  %v994_v48 = vpack.c.bf16 %v110_v42, %v109_v41 }
  0x18   :  { %983 = vmatprep.subr.bf16.mxu1 %v982_v9  ;;  %v992_v47 = vpack.c.bf16 %v76_v40, %v75_v38  ;;  %v93_v49 = vld [vmem:[%s1671_s1 + $0x200] sm:$0xff]  ;;  %v94_v50 = vld [vmem:[%s1671_s1 + $0x208] sm:$0xff]  ;;  %v1026_v52 = vpack.c.bf16 %v142_v45, %v141_v44  ;;  %v111_v54 = vld [vmem:[%s1671_s1 + $0x290] sm:$0xff] }
  0x19   :  { %953 = vmatpush3.bf16.msra.mxu0 %v952_v16  ;;  %272 = vmatprep.mubr.f32.mxu0 %v181_v32  ;;  %v182_v43 = vcombine.high %v180_v33, %v180_v33  ;;  %v125_v51 = vld [vmem:[%s1671_s1 + $0x300] sm:$0xff]  ;;  %v126_v53 = vld [vmem:[%s1671_s1 + $0x308] sm:$0xff]  ;;  %v112_v55 = vld [vmem:[%s1671_s1 + $0x298] sm:$0xff]  ;;  %v996_v58 = vpack.c.bf16 %v94_v50, %v93_v49 }
  0x1a   :  { %955 = vmatprep.subr.bf16.mxu0 %v954_v19  ;;  %v143_v56 = vld [vmem:[%s1671_s1 + $0x390] sm:$0xff]  ;;  %v144_v57 = vld [vmem:[%s1671_s1 + $0x398] sm:$0xff]  ;;  %v1028_v59 = vpack.c.bf16 %v126_v53, %v125_v51  ;;  %v998_v60 = vpack.c.bf16 %v112_v55, %v111_v54  ;;  %v113_v2 = vld [vmem:[%s1671_s1 + $0x2a0] sm:$0xff] }
  0x1b   :  { %985 = vmatpush3.bf16.msra.mxu1 %v984_v18  ;;  %342 = vmatprep.mubr.f32.mxu1 %v182_v43  ;;  %v95_v61 = vld [vmem:[%s1671_s1 + $0x210] sm:$0xff]  ;;  %v96_v62 = vld [vmem:[%s1671_s1 + $0x218] sm:$0xff]  ;;  %v1030_v0 = vpack.c.bf16 %v144_v57, %v143_v56  ;;  %v114_v3 = vld [vmem:[%s1671_s1 + $0x2a8] sm:$0xff] }
  0x1c   :  { %987 = vmatprep.subr.bf16.mxu1 %v986_v23  ;;  %v127_v63 = vld [vmem:[%s1671_s1 + $0x310] sm:$0xff]  ;;  %v128_v1 = vld [vmem:[%s1671_s1 + $0x318] sm:$0xff]  ;;  %v145_v4 = vld [vmem:[%s1671_s1 + $0x3a0] sm:$0xff]  ;;  %v1000_v6 = vpack.c.bf16 %v96_v62, %v95_v61  ;;  %v1002_v8 = vpack.c.bf16 %v114_v3, %v113_v2 }
  0x1d   :  { %957 = vmatpush3.bf16.msra.mxu0 %v956_v31  ;;  %v146_v5 = vld [vmem:[%s1671_s1 + $0x3a8] sm:$0xff]  ;;  %v1032_v7 = vpack.c.bf16 %v128_v1, %v127_v63  ;;  %v97_v9 = vld [vmem:[%s1671_s1 + $0x220] sm:$0xff]  ;;  %v115_v15 = vld [vmem:[%s1671_s1 + $0x2b0] sm:$0xff] }
  0x1e   :  { %959 = vmatprep.subr.bf16.mxu0 %v958_v35  ;;  %v98_v10 = vld [vmem:[%s1671_s1 + $0x228] sm:$0xff]  ;;  %v129_v11 = vld [vmem:[%s1671_s1 + $0x320] sm:$0xff]  ;;  %v1034_v12 = vpack.c.bf16 %v146_v5, %v145_v4  ;;  %v116_v16 = vld [vmem:[%s1671_s1 + $0x2b8] sm:$0xff] }
  0x1f   :  { %989 = vmatpush3.bf16.msra.mxu1 %v988_v34  ;;  %v130_v14 = vld [vmem:[%s1671_s1 + $0x328] sm:$0xff]  ;;  %v147_v17 = vld [vmem:[%s1671_s1 + $0x3b0] sm:$0xff]  ;;  %v148_v18 = vld [vmem:[%s1671_s1 + $0x3b8] sm:$0xff]  ;;  %v1004_v19 = vpack.c.bf16 %v98_v10, %v97_v9  ;;  %v1006_v22 = vpack.c.bf16 %v116_v16, %v115_v15 }
  0x20   :  { %991 = vmatprep.subr.bf16.mxu1 %v990_v39  ;;  %v99_v20 = vld [vmem:[%s1671_s1 + $0x230] sm:$0xff]  ;;  %v1036_v21 = vpack.c.bf16 %v130_v14, %v129_v11  ;;  %v100_v23 = vld [vmem:[%s1671_s1 + $0x238] sm:$0xff]  ;;  %v1038_v26 = vpack.c.bf16 %v148_v18, %v147_v17  ;;  %v118_v28 = vld [vmem:[%s1671_s1 + $0x2c8] sm:$0xff] }
  0x21   :  { %961 = vmatpush3.bf16.msra.mxu0 %v960_v46  ;;  %v131_v24 = vld [vmem:[%s1671_s1 + $0x330] sm:$0xff]  ;;  %v132_v25 = vld [vmem:[%s1671_s1 + $0x338] sm:$0xff]  ;;  %v149_v29 = vld [vmem:[%s1671_s1 + $0x3c0] sm:$0xff] }
  0x22   :  { %995 = vmatprep.subr.bf16.mxu0 %v994_v48  ;;  %v150_v30 = vld [vmem:[%s1671_s1 + $0x3c8] sm:$0xff] }
  0x23   :  { %993 = vmatpush3.bf16.msra.mxu1 %v992_v47  ;;  %v28_v31 = vld [vmem:[%s1670_s0 + $0x8] sm:$0xff] }
  0x24   :  { %1027 = vmatprep.subr.bf16.mxu1 %v1026_v52  ;;  %273 = vmatmul.mubr.f32.vlgmr.msra.gmra.mrb[0].mxu0 %v173_v27  ;;  %v117_v27 = vld [vmem:[%s1671_s1 + $0x2c0] sm:$0xff] }
  0x25   :  { %997 = vmatpush3.bf16.msra.mxu0 %v996_v58 }
  0x26   :  { %343 = vmatmul.mubr.f32.vlgmr.msra.gmra.mrb[0].mxu1 %v180_v33  ;;  %999 = vmatprep.subr.bf16.mxu0 %v998_v60 }
  0x27   :  { %1029 = vmatpush3.bf16.msra.mxu1 %v1028_v59 }
  0x28   :  { %1031 = vmatprep.subr.bf16.mxu1 %v1030_v0 }
  0x29   :  { %1001 = vmatpush3.bf16.msra.mxu0 %v1000_v6 }
  0x2a   :  { %1003 = vmatprep.subr.bf16.mxu0 %v1002_v8 }
  0x2b   :  { %1033 = vmatpush3.bf16.msra.mxu1 %v1032_v7 }
  0x2c   :  { %1035 = vmatprep.subr.bf16.mxu1 %v1034_v12 }
  0x2d   :  { %12 = vsyncpa [#allocation3], 0  ;;  %1005 = vmatpush3.bf16.msra.mxu0 %v1004_v19  ;;  %v1008_v32 = vpack.c.bf16 %v100_v23, %v99_v20  ;;  %v1481_v33 = vrot.slane %v28_v31, %v1320_v13  ;;  %v183_v34 = vcombine.high %v28_v31, %v28_v31  ;;  %v1040_v35 = vpack.c.bf16 %v132_v25, %v131_v24  ;;  %v101_v37 = vld [vmem:[%s1671_s1 + $0x240] sm:$0xff]  ;;  %v102_v38 = vld [vmem:[%s1671_s1 + $0x248] sm:$0xff]  ;;  %s1129_s10 = smov [#allocation2]  }
  0x2e   :  { %1007 = vmatprep.subr.bf16.mxu0 %v1006_v22  ;;  %v1010_v36 = vpack.c.bf16 %v118_v28, %v117_v27  ;;  %v133_v39 = vld [vmem:[%s1671_s1 + $0x340] sm:$0xff]  ;;  %v1042_v40 = vpack.c.bf16 %v150_v30, %v149_v29  ;;  %v134_v41 = vld [vmem:[%s1671_s1 + $0x348] sm:$0xff]  ;;  %v119_v42 = vld [vmem:[%s1671_s1 + $0x2d0] sm:$0xff]  ;;  %v1012_v48 = vpack.c.bf16 %v102_v38, %v101_v37  ;;  %v1126_v22 = vmov 0.0|0.0   ;;  %s690_s11 = sshll.u32 %s1129_s10, 4  ;;  %s691_s11 = int_to_ptr.vmem [resolvable:$true] %s690_s11 }
  0x2f   :  { %1037 = vmatpush3.bf16.msra.mxu1 %v1036_v21  ;;  %v120_v43 = vld [vmem:[%s1671_s1 + $0x2d8] sm:$0xff]  ;;  %v198_v44 = vcombine.high %v1481_v33, %v1481_v33  ;;  %v197_v45 = vrot.slane %v183_v34, %v1320_v13  ;;  %v151_v46 = vld [vmem:[%s1671_s1 + $0x3d0] sm:$0xff]  ;;  %v1044_v50 = vpack.c.bf16 %v134_v41, %v133_v39  ;;  %v121_v56 = vld [vmem:[%s1671_s1 + $0x2e0] sm:$0xff]  ;;  %v1127_v41 = vmov 0.0   ;;  %p1106_p1 = scmp.lt.s32.totalorder %s691_s11, %s691_s11 }
  0x30   :  { %1039 = vmatprep.subr.bf16.mxu1 %v1038_v26  ;;  %v152_v47 = vld [vmem:[%s1671_s1 + $0x3d8] sm:$0xff]  ;;  %v1014_v51 = vpack.c.bf16 %v120_v43, %v119_v42  ;;  %v103_v13 = vld [vmem:[%s1671_s1 + $0x250] sm:$0xff]  ;;  %v122_v57 = vld [vmem:[%s1671_s1 + $0x2e8] sm:$0xff]  ;;  %vm1128_vm0 = vmmov 0   ;;  %vm511_vm1 = vcmask 982016   ;;  %vm608_vm2 = vcmask 1043456  }
  0x31   :  { %1009 = vmatpush3.bf16.msra.mxu0 %v1008_v32  ;;  %412 = vmatprep.mubr.f32.mxu0 %v198_v44  ;;  %v199_v49 = vcombine.high %v197_v45, %v197_v45  ;;  %v104_v52 = vld [vmem:[%s1671_s1 + $0x258] sm:$0xff]  ;;  %v135_v53 = vld [vmem:[%s1671_s1 + $0x350] sm:$0xff]  ;;  %v1046_v54 = vpack.c.bf16 %v152_v47, %v151_v46  ;;  %v153_v58 = vld [vmem:[%s1671_s1 + $0x3e0] sm:$0xff]  ;;  %v1018_v62 = vpack.c.bf16 %v122_v57, %v121_v56  ;;  %vm604_vm3 = vcmask 687104  }
  0x32   :  { %1011 = vmatprep.subr.bf16.mxu0 %v1010_v36  ;;  %v136_v55 = vld [vmem:[%s1671_s1 + $0x358] sm:$0xff]  ;;  %v154_v59 = vld [vmem:[%s1671_s1 + $0x3e8] sm:$0xff]  ;;  %v1016_v60 = vpack.c.bf16 %v104_v52, %v103_v13  ;;  %v105_v63 = vld [vmem:[%s1671_s1 + $0x260] sm:$0xff]  ;;  %vm682_vm4 = vcmask 74752  }
  0x33   :  { %1041 = vmatpush3.bf16.msra.mxu1 %v1040_v35  ;;  %482 = vmatprep.mubr.f32.mxu1 %v199_v49  ;;  %v1048_v61 = vpack.c.bf16 %v136_v55, %v135_v53  ;;  %v106_v0 = vld [vmem:[%s1671_s1 + $0x268] sm:$0xff]  ;;  %v137_v1 = vld [vmem:[%s1671_s1 + $0x360] sm:$0xff]  ;;  %v1050_v2 = vpack.c.bf16 %v154_v59, %v153_v58  ;;  %v123_v4 = vld [vmem:[%s1671_s1 + $0x2f0] sm:$0xff] }
  0x34   :  { %1043 = vmatprep.subr.bf16.mxu1 %v1042_v40  ;;  %v138_v3 = vld [vmem:[%s1671_s1 + $0x368] sm:$0xff]  ;;  %v124_v5 = vld [vmem:[%s1671_s1 + $0x2f8] sm:$0xff]  ;;  %v155_v6 = vld [vmem:[%s1671_s1 + $0x3f0] sm:$0xff]  ;;  %v1020_v8 = vpack.c.bf16 %v106_v0, %v105_v63 }
  0x35   :  { %1013 = vmatpush3.bf16.msra.mxu0 %v1012_v48  ;;  %v156_v7 = vld [vmem:[%s1671_s1 + $0x3f8] sm:$0xff]  ;;  %v1052_v9 = vpack.c.bf16 %v138_v3, %v137_v1  ;;  %v1022_v10 = vpack.c.bf16 %v124_v5, %v123_v4  ;;  %v107_v11 = vld [vmem:[%s1671_s1 + $0x270] sm:$0xff]  ;;  %v489_v19 = vld [vmem:[%s1673_s3] sm:$0xff] }
  0x36   :  { %1015 = vmatprep.subr.bf16.mxu0 %v1014_v51  ;;  %v108_v12 = vld [vmem:[%s1671_s1 + $0x278] sm:$0xff]  ;;  %v1054_v14 = vpack.c.bf16 %v156_v7, %v155_v6  ;;  %v139_v15 = vld [vmem:[%s1671_s1 + $0x370] sm:$0xff]  ;;  %v490_v20 = vld [vmem:[%s1673_s3 + $0x8] sm:$0xff] }
  0x37   :  { %1045 = vmatpush3.bf16.msra.mxu1 %v1044_v50  ;;  %v140_v16 = vld [vmem:[%s1671_s1 + $0x378] sm:$0xff]  ;;  %v1024_v17 = vpack.c.bf16 %v108_v12, %v107_v11  ;;  %v491_v21 = vld [vmem:[%s1673_s3 + $0x10] sm:$0xff]  ;;  %v1059_v23 = vpack.c.bf16 %v490_v20, %v489_v19  ;;  %v493_v26 = vld [vmem:[%s1673_s3 + $0x20] sm:$0xff] }
  0x38   :  { %1047 = vmatprep.subr.bf16.mxu1 %v1046_v54  ;;  %v1056_v18 = vpack.c.bf16 %v140_v16, %v139_v15  ;;  %v492_v24 = vld [vmem:[%s1673_s3 + $0x18] sm:$0xff]  ;;  %v494_v27 = vld [vmem:[%s1673_s3 + $0x28] sm:$0xff]  ;;  %v495_v29 = vld [vmem:[%s1673_s3 + $0x30] sm:$0xff] }
  0x39   :  { %1017 = vmatpush3.bf16.msra.mxu0 %v1016_v60  ;;  %v1062_v25 = vpack.c.bf16 %v492_v24, %v491_v21  ;;  %v1065_v28 = vpack.c.bf16 %v494_v27, %v493_v26  ;;  %v496_v30 = vld [vmem:[%s1673_s3 + $0x38] sm:$0xff]  ;;  %v497_v32 = vld [vmem:[%s1673_s3 + $0x40] sm:$0xff]  ;;  %v499_v35 = vld [vmem:[%s1673_s3 + $0x50] sm:$0xff] }
  0x3a   :  { %1019 = vmatprep.subr.bf16.mxu0 %v1018_v62  ;;  %v1068_v31 = vpack.c.bf16 %v496_v30, %v495_v29  ;;  %v500_v36 = vld [vmem:[%s1673_s3 + $0x58] sm:$0xff]  ;;  %v501_v38 = vld [vmem:[%s1673_s3 + $0x60] sm:$0xff]  ;;  %v502_v39 = vld [vmem:[%s1673_s3 + $0x68] sm:$0xff] }
  0x3b   :  { %1049 = vmatpush3.bf16.msra.mxu1 %v1048_v61  ;;  %v1074_v37 = vpack.c.bf16 %v500_v36, %v499_v35  ;;  %v1077_v40 = vpack.c.bf16 %v502_v39, %v501_v38  ;;  %v503_v42 = vld [vmem:[%s1673_s3 + $0x70] sm:$0xff]  ;;  %v586_v43 = vld [vmem:[%s1675_s5] sm:$0xff]  ;;  %v587_v44 = vld [vmem:[%s1675_s5 + $0x8] sm:$0xff] }
  0x3c   :  { %1051 = vmatprep.subr.bf16.mxu1 %v1050_v2  ;;  %v1080_v46 = vpack.c.bf16 %v587_v44, %v586_v43  ;;  %v589_v47 = vld [vmem:[%s1675_s5 + $0x18] sm:$0xff]  ;;  %v590_v49 = vld [vmem:[%s1675_s5 + $0x20] sm:$0xff]  ;;  %v591_v50 = vld [vmem:[%s1675_s5 + $0x28] sm:$0xff] }
  0x3d   :  { %1021 = vmatpush3.bf16.msra.mxu0 %v1020_v8  ;;  %v1086_v51 = vpack.c.bf16 %v591_v50, %v590_v49  ;;  %v592_v13 = vld [vmem:[%s1675_s5 + $0x30] sm:$0xff]  ;;  %v593_v52 = vld [vmem:[%s1675_s5 + $0x38] sm:$0xff]  ;;  %v698_v55 = vld [vmem:[%s1672_s2] ss:$0 sm:$0xff] }
  0x3e   :  { %1023 = vmatprep.subr.bf16.mxu0 %v1022_v10  ;;  %v1089_v53 = vpack.c.bf16 %v593_v52, %v592_v13  ;;  %v594_v8 = vld [vmem:[%s1675_s5 + $0x40] sm:$0xff]  ;;  %v596_v11 = vld [vmem:[%s1675_s5 + $0x50] sm:$0xf] }
  0x3f   :  { %1053 = vmatpush3.bf16.msra.mxu1 %v1052_v9  ;;  %v595_v9 = vld [vmem:[%s1675_s5 + $0x48] sm:$0xff]  ;;  %v699_v12 = vld [vmem:[%s1674_s4] ss:$0 sm:$0xff] }
  0x40   :  { %1055 = vmatprep.subr.bf16.mxu1 %v1054_v14  ;;  %v1092_v10 = vpack.c.bf16 %v595_v9, %v594_v8 }
  0x41   :  { %1025 = vmatpush3.bf16.msra.mxu0 %v1024_v17 }
  0x42   :  { %1058 = vmatprep.subr.bf16.mxu0 %v1126_v22 }
  0x43   :  { %1057 = vmatpush3.bf16.msra.mxu1 %v1056_v18  ;;  %v701_v18 = vld [vmem:[%s1676_s6] ss:$0 sm:$0xff] }
  0x44   :  { %413 = vmatmul.mubr.f32.vlgmr.msra.gmra.mrb[2].mxu0 %v1481_v33  ;;  %1079 = vmatprep.subr.bf16.mxu1 %v1126_v22  ;;  %v498_v33 = vld [vmem:[%s1673_s3 + $0x48] sm:$0xff] }
  0x45   :  { %1060 = vmatpush3.bf16.msra.mxu0 %v1059_v23  ;;  %v1071_v34 = vpack.c.bf16 %v498_v33, %v497_v32  ;;  %902 = vmatprep.mubr.msk.f32.mxu0 %vm1128_vm0, %v1127_v41 }
  0x46   :  { %483 = vmatmul.mubr.f32.vlgmr.msra.gmra.mrb[2].mxu1 %v197_v45  ;;  %1061 = vmatprep.subr.bf16.mxu0 %v1126_v22  ;;  %v588_v45 = vld [vmem:[%s1675_s5 + $0x10] sm:$0xff]  ;;  %s1101_s5 = scalar_lea.vmem %s691_s11, 32 }
  0x47   :  { %927 = vmatprep.mubr.msk.f32.mxu1 %vm1128_vm0, %v1127_v41  ;;  %1081 = vmatpush3.bf16.msra.mxu1 %v1080_v46  ;;  %v1083_v48 = vpack.c.bf16 %v589_v47, %v588_v45  ;;  %p1102_p0 = scmp.ne.s32.totalorder %s691_s11, %s1101_s5  ;;  %p1107_p2 = scmp.lt.s32.totalorder %s1101_s5, %s1101_s5 }
  0x48   :  { %1082 = vmatprep.subr.bf16.mxu1 %v1126_v22 }
  0x49   :  { %1063 = vmatpush3.bf16.msra.mxu0 %v1062_v25  ;;  %p1108_p3 = por %p1107_p2, %p1106_p1 }
  0x4a   :  { %1064 = vmatprep.subr.bf16.mxu0 %v1126_v22 }
  0x4b   :  { %1084 = vmatpush3.bf16.msra.mxu1 %v1083_v48  ;;  %p1109_p4 = pnand %p1108_p3, %p1102_p0 }
  0x4c   :  { %1085 = vmatprep.subr.bf16.mxu1 %v1126_v22 }
  0x4d   :  { %1066 = vmatpush3.bf16.msra.mxu0 %v1065_v28 }
  0x4e   :  { %1067 = vmatprep.subr.bf16.mxu0 %v1126_v22 }
  0x4f   :  { %1087 = vmatpush3.bf16.msra.mxu1 %v1086_v51 }
  0x50   :  { %1088 = vmatprep.subr.bf16.mxu1 %v1126_v22 }
  0x51   :  { %1069 = vmatpush3.bf16.msra.mxu0 %v1068_v31 }
  0x52   :  { %1070 = vmatprep.subr.bf16.mxu0 %v1126_v22 }
  0x53   :  { %1090 = vmatpush3.bf16.msra.mxu1 %v1089_v53 }
  0x54   :  { %1091 = vmatprep.subr.bf16.mxu1 %v1126_v22 }
  0x55   :  { %1072 = vmatpush3.bf16.msra.mxu0 %v1071_v34 }
  0x56   :  { %1073 = vmatprep.subr.bf16.mxu0 %v1126_v22 }
  0x57   :  { %1093 = vmatpush3.bf16.msra.mxu1 %v1092_v10 }
  0x58   :  { %925 = vmatprep.subr.mxu1 %v1127_v41 }
  0x59   :  { %1075 = vmatpush3.bf16.msra.mxu0 %v1074_v37 }
  0x5a   :  { %1076 = vmatprep.subr.bf16.mxu0 %v1126_v22 }
  0x5b   :  { %926 = vmatpush3.msk.msra.mxu1 %vm608_vm2, %v596_v11 }
  0x5d   :  { %1078 = vmatpush3.bf16.msra.mxu0 %v1077_v40 }
  0x5e   :  { %900 = vmatprep.subr.mxu0 %v1127_v41 }
  0x61   :  { %901 = vmatpush3.msra.mxu0 %v503_v42 }
  0xf7   :  { %v736_v54 = vpop.f32.mrb[0].mxu0 }
  0xf8   :  { %v737_v56 = vpop.f32.mrb[1].mxu0 }
  0xf9   :  { %v771_v57 = vpop.f32.mrb[0].mxu1  ;;  %v738_v58 = vadd.f32 %v737_v56, %v736_v54 }
  0xfa   :  { %v772_v59 = vpop.f32.mrb[1].mxu1 }
  0xfb   :  { %v773_v60 = vadd.f32 %v772_v59, %v771_v57  ;;  %v275_v61 = vadd.f32 %v738_v58, %v698_v55 }
  0xfd   :  { %v345_v62 = vadd.f32 %v773_v60, %v275_v61 }
 0x117   :  { %v806_v63 = vpop.f32.mrb[2].mxu0 }
 0x118   :  { %v807_v0 = vpop.f32.mrb[3].mxu0 }
 0x119   :  { %v841_v1 = vpop.f32.mrb[2].mxu1  ;;  %v808_v2 = vadd.f32 %v807_v0, %v806_v63 }
 0x11a   :  { %v842_v3 = vpop.f32.mrb[3].mxu1 }
 0x11b   :  { %v843_v4 = vadd.f32 %v842_v3, %v841_v1  ;;  %v415_v5 = vadd.f32 %v808_v2, %v345_v62 }
 0x11d   :  { %v485_v6 = vadd.f32 %v843_v4, %v415_v5 }
 0x11f   :  { %v488_v7 = vmax.f32 %v485_v6, 0.0 }
 0x121   :  { %903 = vmatmul.mubr.msk.f32.vlgmr.msra.gmra.mrb[4].mxu0 %vm511_vm1, %v488_v7 }
 0x1f4   :  { %v581_v14 = vpop.f32.mrb[4].mxu0 }
 0x1f5   :  { %v582_v15 = vadd.f32 %v699_v12, %v581_v14  ;;  %v904_v16 = vpop.f32.mrb[5].mxu0 }
 0x1f7   :  { %v585_v17 = vmax.f32 %v582_v15, 0.0 }
 0x1f9   :  { %928 = vmatmul.mubr.msk.f32.vlgmr.msra.gmra.mrb[4].mxu1 %vm604_vm3, %v585_v17 }
 0x2cc   :  { %v678_v19 = vpop.f32.mrb[4].mxu1 }
 0x2cd   :  { %v679_v20 = vadd.f32 %v701_v18, %v678_v19  ;;  %v929_v21 = vpop.f32.mrb[5].mxu1 }
 0x2cf   :  { %683 = vst.msk [vmem:[#allocation2] sm:$0x3] %vm682_vm4, %v679_v20 }
 0x2d0   :  { %1112 = shalt.err (!%p1109_p4)
}
 0x2d1   :  { %s1113_s13 = scalar_lea.hbm %s1677_s7, 32 }
 0x2d2   :  { %p1114_p5 = scmp.ne.s32.totalorder %s1677_s7, %s1113_s13  ;;  %p1117_p6 = scmp.lt.u32.totalorder %s1113_s13, %s1677_s7 }
 0x2d4   :  { %p1119_p7 = pnand %p1117_p6, %p1114_p5 }
 0x2d6   :  { %1122 = shalt.err (!%p1119_p7)
}
 0x2d7   :  { %693 = dma.vmem_to_hbm [thread:$0]  %s691_s11, 32, %s1677_s7, [#allocation3]  }
 0x2d8   :  { %1123 = dma.done.wait [#allocation3], 32  }
 0x2d9   :  { %1124 = vsyncadd [#allocation3], 4294967264 }
 0x2da   :  { %697 = vsyncpa [#allocation3], 1 }

</bundles_post_ra>
